<compile_context>
chip_gen: v7x
topology: tpu7x:2x2x1
jax: 0.10.0
libtpu: 0.0.40
codegen_flags: <defaults>
</compile_context>

<pallas_src>
import jax
import jax.numpy as jnp
from jax.experimental import pallas as pl
from jax.experimental.pallas import tpu as pltpu

# ----------------------------- configuration --------------------------------
B = 2                       # batch
TARGET_DIM = 4              # multivariate target dimension
CONTEXT_LEN = 8
PRED_LEN = 4
SUB_LEN = CONTEXT_LEN + PRED_LEN          # unroll length (12)
HIST_LEN = 16               # history length (>= max(lag) + SUB_LEN)
LAGS_SEQ = [1, 2]
NUM_CELLS = 32              # RNN hidden size
TIME_FEAT_DIM = 4
EMBED_DIM = 1
COND_LEN = 32               # conditioning_length
DIFF_STEPS = 10
BETA_END = 0.1
DENOISE_HIDDEN = 32
INPUT_SIZE = len(LAGS_SEQ) * TARGET_DIM + TARGET_DIM * EMBED_DIM + TIME_FEAT_DIM  # 16

ROWP = 8                    # sublane-padded rows per timestep (real rows 0:B)
TR = SUB_LEN * ROWP         # 96 padded time-major rows
CTXR = CONTEXT_LEN * ROWP   # 64 padded context rows
OUT_W = 128                 # lane-dense output slab width

# --- packed parameter slab layout (row offsets, 8-row aligned blocks) --------
W_LANES = 96                # = 3 * NUM_CELLS (widest piece)
R_WIH = 0                   # (INPUT_SIZE, 3H)   rows 0:16
R_WHH = 16                  # (H, 3H)            rows 16:48
R_WPROJ = 48                # (H, COND)          rows 48:80
R_WD1 = 80                  # (D, DH)            rows 80:84 (block 80:88)
R_WD2 = 88                  # (COND, DH)         rows 88:120
R_WD3 = 120                 # (DH, D)            rows 120:152
R_WFRE = 152                # (D, H)             rows 152:156 (block 152:160)
R_BIAS = 160                # 6 bias rows + 2 pad rows -> 160:168
W_ROWS = 168

# --- packed activation slab layout (row offsets, common 16-lane width) -------
ACT_LANES = INPUT_SIZE      # 16
A_IN = 0                    # inputs       rows   0: 96  lanes 0:16
A_PCTX = TR                 # past ctx tgt rows  96:160  lanes 0:4
A_XN = TR + CTXR            # noised tgt   rows 160:256  lanes 0:4
A_NOISE = 2 * TR + CTXR     # noise        rows 256:352  lanes 0:4
A_ROWS = 3 * TR + CTXR      # 352


# ----------------------------- fused Pallas kernel ---------------------------
def _fused_kernel(w_ref, act_ref, mix_ref, out_ref):
    """GRU unroll + Conv_FT-mix + ArgProj + denoiser + per-step L2, fused."""
    f32 = jnp.float32
    H = NUM_CELLS
    H3 = 3 * H

    # ---- unpack parameter slab (static slices; no extra DMAs) ---------------
    w_ih = w_ref[R_WIH:R_WIH + INPUT_SIZE, :]                  # (16, 96)
    w_hh = w_ref[R_WHH:R_WHH + H, :]                           # (32, 96)
    w_proj = w_ref[R_WPROJ:R_WPROJ + H, 0:COND_LEN]            # (32, 32)
    w_d1 = w_ref[R_WD1:R_WD1 + TARGET_DIM, 0:DENOISE_HIDDEN]   # (4, 32)
    w_d2 = w_ref[R_WD2:R_WD2 + COND_LEN, 0:DENOISE_HIDDEN]     # (32, 32)
    w_d3 = w_ref[R_WD3:R_WD3 + DENOISE_HIDDEN, 0:TARGET_DIM]   # (32, 4)
    w_fre = w_ref[R_WFRE:R_WFRE + TARGET_DIM, 0:H]             # (4, 32)
    b_ih = w_ref[R_BIAS + 0:R_BIAS + 1, :]                     # (1, 96)
    b_hh = w_ref[R_BIAS + 1:R_BIAS + 2, :]                     # (1, 96)
    b_fre = w_ref[R_BIAS + 2:R_BIAS + 3, 0:H]                  # (1, 32)
    b_proj = w_ref[R_BIAS + 3:R_BIAS + 4, 0:COND_LEN]          # (1, 32)
    b_d1 = w_ref[R_BIAS + 4:R_BIAS + 5, 0:DENOISE_HIDDEN]      # (1, 32)
    b_d3 = w_ref[R_BIAS + 5:R_BIAS + 6, 0:TARGET_DIM]          # (1, 4)

    # ---- unpack activation slab (8-sublane-aligned row blocks) --------------
    x_in = act_ref[A_IN:A_IN + TR, 0:INPUT_SIZE]               # (96, 16)
    pctx = act_ref[A_PCTX:A_PCTX + CTXR, 0:TARGET_DIM]         # (64, 4)
    xn = act_ref[A_XN:A_XN + TR, 0:TARGET_DIM]                 # (96, 4)
    noise = act_ref[A_NOISE:A_NOISE + TR, 0:TARGET_DIM]        # (96, 4)

    # ---- GRU (PyTorch gate order r, z, n) ------------------------------------
    # Input-side projection hoisted out of the recurrence: one wide MXU push.
    xproj = jnp.dot(x_in, w_ih, preferred_element_type=f32) + b_ih   # (96, 96)
    # Pre-split the per-step (8, 96) slabs: aligned value slices, off the
    # serial critical path of the recurrence.
    gis = [xproj[t * ROWP:(t + 1) * ROWP, :] for t in range(SUB_LEN)]

    h = jnp.zeros((ROWP, H), f32)
    hs = []
    # Fully unrolled (static trip count T=12): straight-line code so the
    # scheduler can overlap step t+1's work with step t's VPU/EUP drain.
    for t in range(SUB_LEN):
        gi = gis[t]
        gh = jnp.dot(h, w_hh, preferred_element_type=f32) + b_hh     # (8, 96)
        rz = jax.nn.sigmoid(gi[:, 0:2 * H] + gh[:, 0:2 * H])         # fused EUP push
        r = rz[:, 0:H]
        z = rz[:, H:2 * H]
        n = jnp.tanh(gi[:, 2 * H:H3] + r * gh[:, 2 * H:H3])
        h = (1.0 - z) * n + z * h
        hs.append(h)
    # Single aligned assembly of the hidden-state slab (no per-step stores).
    rnn = jnp.concatenate(hs, axis=0)                                # (96, 32)

    # ---- freq feature + weight1/weight2 mix over the context part -----------
    # TODO(synk): Conv_FT (FFT-based frequency block) source is not provided;
    # a per-timestep dense projection D -> num_cells is used as its surrogate.
    # (As in the original forward, it consumes the UNSCALED past_target_cdf.)
    freq = jnp.dot(pctx, w_fre, preferred_element_type=f32) + b_fre  # (64, 32)
    mixed = mix_ref[0] * rnn[0:CTXR, :] + mix_ref[1] * freq
    rnn = jnp.concatenate([mixed, rnn[CTXR:TR, :]], axis=0)          # (96, 32)

    # ---- DiffusionOutput ArgProj: single matmul over all rows ----------------
    distr = jnp.dot(rnn, w_proj, preferred_element_type=f32) + b_proj  # (96, 32)

    # ---- denoiser + per-step L2 "likelihood" ---------------------------------
    # TODO(synk): EpsilonTheta's dilated residual-conv stack is not provided;
    # a small conditional MLP denoiser is used in its place.
    hdn = jnp.maximum(
        jnp.dot(xn, w_d1, preferred_element_type=f32)
        + jnp.dot(distr, w_d2, preferred_element_type=f32)
        + b_d1, 0.0)                                                  # (96, 32)
    eps = jnp.dot(hdn, w_d3, preferred_element_type=f32) + b_d3       # (96, 4)
    err = noise - eps
    lik = jnp.mean(err * err, axis=-1, keepdims=True)                 # (96, 1)

    # ---- single lane-dense writeback: distr lanes 0:32, lik lane 32 ----------
    pad = jnp.zeros((TR, OUT_W - COND_LEN - 1), f32)
    out_ref[...] = jnp.concatenate([distr, lik, pad], axis=-1)        # (96, 128)


# ----------------------------- host-side packing -----------------------------
def _pad2(x, rows, cols):
    x = x.astype(jnp.float32)
    r, c = x.shape
    return jnp.pad(x, ((0, rows - r), (0, cols - c)))


def _tm_pad(x):
    """(B, T, F) batch-major -> (T*ROWP, F) time-major, batch padded to 8 rows."""
    Bb, T, F = x.shape
    x = jnp.transpose(x, (1, 0, 2))                      # (T, B, F)
    x = jnp.pad(x, ((0, 0), (0, ROWP - Bb), (0, 0)))     # (T, 8, F)
    return x.reshape(T * ROWP, F)


def _pack_weights(params):
    H = NUM_CELLS
    pieces = [
        _pad2(params["w_ih"].T, 16, W_LANES),            # rows   0: 16
        _pad2(params["w_hh"].T, 32, W_LANES),            # rows  16: 48
        _pad2(params["w_proj"], 32, W_LANES),            # rows  48: 80
        _pad2(params["w_den1"], 8, W_LANES),             # rows  80: 88
        _pad2(params["w_den2"], 32, W_LANES),            # rows  88:120
        _pad2(params["w_den3"], 32, W_LANES),            # rows 120:152
        _pad2(params["w_fre"], 8, W_LANES),              # rows 152:160
        _pad2(params["b_ih"].reshape(1, 3 * H), 1, W_LANES),   # row 160
        _pad2(params["b_hh"].reshape(1, 3 * H), 1, W_LANES),   # row 161
        _pad2(params["b_fre"], 1, W_LANES),              # row 162
        _pad2(params["b_proj"], 1, W_LANES),             # row 163
        _pad2(params["b_den1"], 1, W_LANES),             # row 164
        _pad2(params["b_den3"], 1, W_LANES),             # row 165
        jnp.zeros((2, W_LANES), jnp.float32),            # rows 166:168 pad
    ]
    return jnp.concatenate(pieces, axis=0)               # (168, 96)


def _pack_acts(inputs, pctx, xn, noise):
    pieces = [
        _pad2(_tm_pad(inputs), TR, ACT_LANES),
        _pad2(_tm_pad(pctx), CTXR, ACT_LANES),
        _pad2(_tm_pad(xn), TR, ACT_LANES),
        _pad2(_tm_pad(noise), TR, ACT_LANES),
    ]
    return jnp.concatenate(pieces, axis=0)               # (352, 16)


# ----------------------------- JAX glue --------------------------------------
def get_lagged_subsequences(sequence, indices, subsequences_length):
    seq_len = sequence.shape[1]
    assert max(indices) + subsequences_length <= seq_len
    parts = []
    for lag in indices:
        begin = seq_len - lag - subsequences_length
        end = seq_len - lag
        parts.append(sequence[:, begin:end, :])
    return jnp.stack(parts, axis=-1)          # (B, sub_len, D, L)


def mean_scaler(data, observed, minimum_scale=1e-10):
    """gluonts MeanScaler (keepdim=True)."""
    num_observed = jnp.sum(observed, axis=1, keepdims=True)                   # (B,1,D)
    sum_observed = jnp.sum(jnp.abs(data) * observed, axis=1, keepdims=True)   # (B,1,D)
    total_observed = jnp.sum(num_observed, axis=0)                            # (1,D)
    default_scale = jnp.sum(sum_observed, axis=0) / jnp.maximum(total_observed, 1.0)
    scale = sum_observed / jnp.maximum(num_observed, 1.0)
    scale = jnp.where(num_observed > 0, scale, default_scale[None])
    scale = jnp.maximum(scale, minimum_scale)
    return data / scale, scale


def init_params(key):
    ks = jax.random.split(key, 16)
    H = NUM_CELLS
    k_rnn = 1.0 / jnp.sqrt(jnp.float32(H))
    return {
        # nn.Parameter(torch.rand(1,1,1)) — stored flat, read as SMEM scalars
        "weight1": jax.random.uniform(ks[0], (1,), dtype=jnp.float32),
        "weight2": jax.random.uniform(ks[1], (1,), dtype=jnp.float32),
        # single-layer GRU (cell_type='GRU'; dropout irrelevant for num_layers=1)
        "w_ih": jax.random.uniform(ks[2], (3 * H, INPUT_SIZE), minval=-k_rnn, maxval=k_rnn),
        "w_hh": jax.random.uniform(ks[3], (3 * H, H), minval=-k_rnn, maxval=k_rnn),
        "b_ih": jax.random.uniform(ks[4], (3 * H,), minval=-k_rnn, maxval=k_rnn),
        "b_hh": jax.random.uniform(ks[5], (3 * H,), minval=-k_rnn, maxval=k_rnn),
        # nn.Embedding(target_dim, 1)
        "embed": jax.random.normal(ks[6], (TARGET_DIM, EMBED_DIM)),
        # Conv_FT surrogate
        "w_fre": jax.random.normal(ks[7], (TARGET_DIM, NUM_CELLS)) * 0.1,
        "b_fre": jnp.zeros((1, NUM_CELLS), jnp.float32),
        # DiffusionOutput ArgProj: Linear(num_cells -> conditioning_length)
        "w_proj": jax.random.uniform(ks[8], (NUM_CELLS, COND_LEN), minval=-k_rnn, maxval=k_rnn),
        "b_proj": jnp.zeros((1, COND_LEN), jnp.float32),
        # denoiser (EpsilonTheta surrogate)
        "w_den1": jax.random.normal(ks[9], (TARGET_DIM, DENOISE_HIDDEN)) * 0.1,
        "w_den2": jax.random.normal(ks[10], (COND_LEN, DENOISE_HIDDEN)) * 0.1,
        "b_den1": jnp.zeros((1, DENOISE_HIDDEN), jnp.float32),
        "w_den3": jax.random.normal(ks[11], (DENOISE_HIDDEN, TARGET_DIM)) * 0.1,
        "b_den3": jnp.zeros((1, TARGET_DIM), jnp.float32),
    }


def forward(params, target_dimension_indicator, past_time_feat, past_target_cdf,
            past_observed_values, past_is_pad, future_time_feat, future_target_cdf,
            future_observed_values, rng):
    # ---- unroll_encoder input assembly --------------------------------------
    past_observed = jnp.minimum(past_observed_values, 1.0 - past_is_pad[..., None])
    time_feat = jnp.concatenate(
        [past_time_feat[:, -CONTEXT_LEN:, :], future_time_feat], axis=1)
    sequence = jnp.concatenate([past_target_cdf, future_target_cdf], axis=1)
    lags = get_lagged_subsequences(sequence, LAGS_SEQ, SUB_LEN)       # (B,sub,D,L)
    _, scale = mean_scaler(past_target_cdf[:, -CONTEXT_LEN:, :],
                           past_observed[:, -CONTEXT_LEN:, :])        # (B,1,D)

    lags_scaled = lags / scale[..., None]
    input_lags = lags_scaled.reshape(B, SUB_LEN, len(LAGS_SEQ) * TARGET_DIM)
    index_emb = params["embed"][target_dimension_indicator]           # (B,D,E)
    rep_emb = jnp.broadcast_to(
        index_emb[:, None, :, :], (B, SUB_LEN, TARGET_DIM, EMBED_DIM)
    ).reshape(B, SUB_LEN, TARGET_DIM * EMBED_DIM)
    inputs = jnp.concatenate([input_lags, rep_emb, time_feat], axis=-1)  # (B,sub,16)

    target = jnp.concatenate(
        [past_target_cdf[:, -CONTEXT_LEN:, :], future_target_cdf], axis=1)  # (B,sub,D)

    # ---- diffusion q-sample (elementwise noising; lives with the RNG) -------
    # TODO(synk): per-(b,t) random diffusion step is a stated simplification of
    # TimeGrad's per-series step sampling.
    k_t, k_noise = jax.random.split(rng)
    betas = jnp.linspace(1e-4, BETA_END, DIFF_STEPS, dtype=jnp.float32)
    acp = jnp.cumprod(1.0 - betas)
    t_idx = jax.random.randint(k_t, (B * SUB_LEN,), 0, DIFF_STEPS)
    coef_a = jnp.sqrt(acp[t_idx]).reshape(B, SUB_LEN, 1)
    coef_b = jnp.sqrt(1.0 - acp[t_idx]).reshape(B, SUB_LEN, 1)
    noise = jax.random.normal(k_noise, (B, SUB_LEN, TARGET_DIM), dtype=jnp.float32)
    xn = coef_a * (target / scale) + coef_b * noise                   # noised scaled target

    # ---- host-side slab packing (3 refs total instead of 18) ----------------
    wslab = _pack_weights(params)                                     # (168, 96)
    actslab = _pack_acts(inputs, past_target_cdf[:, -CONTEXT_LEN:, :], xn, noise)
    mix = jnp.concatenate([params["weight1"], params["weight2"]]).astype(jnp.float32)

    flops = 2 * (TR * INPUT_SIZE * 3 * NUM_CELLS
                 + SUB_LEN * ROWP * NUM_CELLS * 3 * NUM_CELLS
                 + CTXR * TARGET_DIM * NUM_CELLS
                 + TR * NUM_CELLS * COND_LEN
                 + TR * TARGET_DIM * DENOISE_HIDDEN
                 + TR * COND_LEN * DENOISE_HIDDEN
                 + TR * DENOISE_HIDDEN * TARGET_DIM)
    cost = pl.CostEstimate(
        flops=flops,
        transcendentals=SUB_LEN * ROWP * 3 * NUM_CELLS,
        bytes_accessed=4 * (W_ROWS * W_LANES + A_ROWS * ACT_LANES + TR * OUT_W) + 8)

    out = pl.pallas_call(
        _fused_kernel,
        out_shape=jax.ShapeDtypeStruct((TR, OUT_W), jnp.float32),
        in_specs=[
            pl.BlockSpec(memory_space=pltpu.MemorySpace.VMEM),   # parameter slab
            pl.BlockSpec(memory_space=pltpu.MemorySpace.VMEM),   # activation slab
            pl.BlockSpec(memory_space=pltpu.MemorySpace.SMEM),   # mix scalars
        ],
        out_specs=pl.BlockSpec(memory_space=pltpu.MemorySpace.VMEM),
        cost_estimate=cost,
    )(wslab, actslab, mix)

    # ---- layout plumbing back to batch-major + tiny loss reduction ----------
    out3 = out.reshape(SUB_LEN, ROWP, OUT_W)[:, :B, :]                # drop pad rows
    distr_args = jnp.transpose(out3[:, :, 0:COND_LEN], (1, 0, 2))     # (B,sub,C)
    likelihoods = jnp.transpose(out3[:, :, COND_LEN:COND_LEN + 1], (1, 0, 2))  # (B,sub,1)

    observed_values = jnp.concatenate(
        [past_observed[:, -CONTEXT_LEN:, :], future_observed_values], axis=1)
    loss_weights = jnp.min(observed_values, axis=-1, keepdims=True)          # (B,sub,1)
    num = jnp.sum(likelihoods * loss_weights, axis=1)                        # (B,1)
    den = jnp.maximum(jnp.sum(loss_weights, axis=1), 1.0)
    loss = jnp.mean(num / den)                                               # weighted_average.mean()

    # TODO(synk): CR_compensate is constructed in __init__ but never used in forward.
    return loss, likelihoods, distr_args


# ----------------------------- driver ----------------------------------------
if __name__ == "__main__":
    root = jax.random.PRNGKey(0)
    kp, kd, kr = jax.random.split(root, 3)
    params = init_params(kp)
    dks = jax.random.split(kd, 4)

    target_dimension_indicator = jnp.tile(jnp.arange(TARGET_DIM)[None, :], (B, 1))
    past_time_feat = jax.random.normal(dks[0], (B, HIST_LEN, TIME_FEAT_DIM))
    past_target_cdf = jax.random.uniform(dks[1], (B, HIST_LEN, TARGET_DIM)) + 0.1
    past_observed_values = jnp.ones((B, HIST_LEN, TARGET_DIM), jnp.float32)
    past_is_pad = jnp.zeros((B, HIST_LEN), jnp.float32)
    future_time_feat = jax.random.normal(dks[2], (B, PRED_LEN, TIME_FEAT_DIM))
    future_target_cdf = jax.random.uniform(dks[3], (B, PRED_LEN, TARGET_DIM)) + 0.1
    future_observed_values = jnp.ones((B, PRED_LEN, TARGET_DIM), jnp.float32)

    fwd = jax.jit(forward)
    loss, likelihoods, distr_args = fwd(
        params, target_dimension_indicator, past_time_feat, past_target_cdf,
        past_observed_values, past_is_pad, future_time_feat, future_target_cdf,
        future_observed_values, kr)
    jax.block_until_ready((loss, likelihoods, distr_args))

    assert loss.shape == ()
    assert likelihoods.shape == (B, SUB_LEN, 1)
    assert distr_args.shape == (B, SUB_LEN, COND_LEN)
    assert bool(jnp.isfinite(loss))
    print("KERNEL_OK")
</pallas_src>

<mosaic_0001>
module attributes {stable_mosaic.version = 11 : i64} {
  func.func @_fused_kernel(%arg0: memref<168x96xf32, #tpu.memory_space<vmem>>, %arg1: memref<352x16xf32, #tpu.memory_space<vmem>>, %arg2: memref<2xf32, #tpu.memory_space<smem>>, %arg3: memref<96x128xf32, #tpu.memory_space<vmem>>) attributes {dimension_semantics = [], scalar_prefetch = 0 : i64, scratch_operands = 0 : i64, tpu.core_type = #tpu.core_type<tc>} {
    %c0 = arith.constant 0 : index
    %c0_0 = arith.constant 0 : index
    %0 = vector.load %arg0[%c0, %c0_0] : memref<168x96xf32, #tpu.memory_space<vmem>>, vector<16x96xf32>
    %c16 = arith.constant 16 : index
    %c0_1 = arith.constant 0 : index
    %1 = vector.load %arg0[%c16, %c0_1] : memref<168x96xf32, #tpu.memory_space<vmem>>, vector<32x96xf32>
    %c48 = arith.constant 48 : index
    %c0_2 = arith.constant 0 : index
    %2 = vector.load %arg0[%c48, %c0_2] : memref<168x96xf32, #tpu.memory_space<vmem>>, vector<32x32xf32>
    %c80 = arith.constant 80 : index
    %c0_3 = arith.constant 0 : index
    %3 = vector.load %arg0[%c80, %c0_3] : memref<168x96xf32, #tpu.memory_space<vmem>>, vector<4x32xf32>
    %c88 = arith.constant 88 : index
    %c0_4 = arith.constant 0 : index
    %4 = vector.load %arg0[%c88, %c0_4] : memref<168x96xf32, #tpu.memory_space<vmem>>, vector<32x32xf32>
    %c120 = arith.constant 120 : index
    %c0_5 = arith.constant 0 : index
    %5 = vector.load %arg0[%c120, %c0_5] : memref<168x96xf32, #tpu.memory_space<vmem>>, vector<32x4xf32>
    %c152 = arith.constant 152 : index
    %c0_6 = arith.constant 0 : index
    %6 = vector.load %arg0[%c152, %c0_6] : memref<168x96xf32, #tpu.memory_space<vmem>>, vector<4x32xf32>
    %c160 = arith.constant 160 : index
    %c0_7 = arith.constant 0 : index
    %7 = vector.load %arg0[%c160, %c0_7] : memref<168x96xf32, #tpu.memory_space<vmem>>, vector<1x96xf32>
    %c161 = arith.constant 161 : index
    %c0_8 = arith.constant 0 : index
    %8 = vector.load %arg0[%c161, %c0_8] : memref<168x96xf32, #tpu.memory_space<vmem>>, vector<1x96xf32>
    %c162 = arith.constant 162 : index
    %c0_9 = arith.constant 0 : index
    %9 = vector.load %arg0[%c162, %c0_9] : memref<168x96xf32, #tpu.memory_space<vmem>>, vector<1x32xf32>
    %c163 = arith.constant 163 : index
    %c0_10 = arith.constant 0 : index
    %10 = vector.load %arg0[%c163, %c0_10] : memref<168x96xf32, #tpu.memory_space<vmem>>, vector<1x32xf32>
    %c164 = arith.constant 164 : index
    %c0_11 = arith.constant 0 : index
    %11 = vector.load %arg0[%c164, %c0_11] : memref<168x96xf32, #tpu.memory_space<vmem>>, vector<1x32xf32>
    %c165 = arith.constant 165 : index
    %c0_12 = arith.constant 0 : index
    %12 = vector.load %arg0[%c165, %c0_12] : memref<168x96xf32, #tpu.memory_space<vmem>>, vector<1x4xf32>
    %c0_13 = arith.constant 0 : index
    %c0_14 = arith.constant 0 : index
    %13 = vector.load %arg1[%c0_13, %c0_14] : memref<352x16xf32, #tpu.memory_space<vmem>>, vector<96x16xf32>
    %c96 = arith.constant 96 : index
    %c0_15 = arith.constant 0 : index
    %14 = vector.load %arg1[%c96, %c0_15] : memref<352x16xf32, #tpu.memory_space<vmem>>, vector<64x4xf32>
    %c160_16 = arith.constant 160 : index
    %c0_17 = arith.constant 0 : index
    %15 = vector.load %arg1[%c160_16, %c0_17] : memref<352x16xf32, #tpu.memory_space<vmem>>, vector<96x4xf32>
    %c256 = arith.constant 256 : index
    %c0_18 = arith.constant 0 : index
    %16 = vector.load %arg1[%c256, %c0_18] : memref<352x16xf32, #tpu.memory_space<vmem>>, vector<96x4xf32>
    %cst = arith.constant dense<0.000000e+00> : vector<96x96xf32>
    %17 = tpu.matmul %13, %0, %cst {dimension_numbers = #tpu.dot_dimension_numbers<[1], [0], [0], [1], [0, 0, 1, 1], [], []>} : vector<96x16xf32>, vector<16x96xf32>, vector<96x96xf32> -> vector<96x96xf32>
    %18 = vector.broadcast %7 : vector<1x96xf32> to vector<96x96xf32>
    %19 = arith.addf %17, %18 : vector<96x96xf32>
    %20 = vector.extract_strided_slice %19 {offsets = [0, 0], sizes = [8, 96], strides = [1, 1]} : vector<96x96xf32> to vector<8x96xf32>
    %21 = vector.extract_strided_slice %19 {offsets = [8, 0], sizes = [8, 96], strides = [1, 1]} : vector<96x96xf32> to vector<8x96xf32>
    %22 = vector.extract_strided_slice %19 {offsets = [16, 0], sizes = [8, 96], strides = [1, 1]} : vector<96x96xf32> to vector<8x96xf32>
    %23 = vector.extract_strided_slice %19 {offsets = [24, 0], sizes = [8, 96], strides = [1, 1]} : vector<96x96xf32> to vector<8x96xf32>
    %24 = vector.extract_strided_slice %19 {offsets = [32, 0], sizes = [8, 96], strides = [1, 1]} : vector<96x96xf32> to vector<8x96xf32>
    %25 = vector.extract_strided_slice %19 {offsets = [40, 0], sizes = [8, 96], strides = [1, 1]} : vector<96x96xf32> to vector<8x96xf32>
    %26 = vector.extract_strided_slice %19 {offsets = [48, 0], sizes = [8, 96], strides = [1, 1]} : vector<96x96xf32> to vector<8x96xf32>
    %27 = vector.extract_strided_slice %19 {offsets = [56, 0], sizes = [8, 96], strides = [1, 1]} : vector<96x96xf32> to vector<8x96xf32>
    %28 = vector.extract_strided_slice %19 {offsets = [64, 0], sizes = [8, 96], strides = [1, 1]} : vector<96x96xf32> to vector<8x96xf32>
    %29 = vector.extract_strided_slice %19 {offsets = [72, 0], sizes = [8, 96], strides = [1, 1]} : vector<96x96xf32> to vector<8x96xf32>
    %30 = vector.extract_strided_slice %19 {offsets = [80, 0], sizes = [8, 96], strides = [1, 1]} : vector<96x96xf32> to vector<8x96xf32>
    %31 = vector.extract_strided_slice %19 {offsets = [88, 0], sizes = [8, 96], strides = [1, 1]} : vector<96x96xf32> to vector<8x96xf32>
    %cst_19 = arith.constant 0.000000e+00 : f32
    %32 = vector.broadcast %cst_19 : f32 to vector<8x32xf32>
    %cst_20 = arith.constant dense<0.000000e+00> : vector<8x96xf32>
    %33 = tpu.matmul %32, %1, %cst_20 {dimension_numbers = #tpu.dot_dimension_numbers<[1], [0], [0], [1], [0, 0, 1, 1], [], []>} : vector<8x32xf32>, vector<32x96xf32>, vector<8x96xf32> -> vector<8x96xf32>
    %34 = vector.broadcast %8 : vector<1x96xf32> to vector<8x96xf32>
    %35 = arith.addf %33, %34 : vector<8x96xf32>
    %36 = vector.extract_strided_slice %20 {offsets = [0, 0], sizes = [8, 64], strides = [1, 1]} : vector<8x96xf32> to vector<8x64xf32>
    %37 = vector.extract_strided_slice %35 {offsets = [0, 0], sizes = [8, 64], strides = [1, 1]} : vector<8x96xf32> to vector<8x64xf32>
    %38 = arith.addf %36, %37 : vector<8x64xf32>
    %39 = arith.negf %38 : vector<8x64xf32>
    %40 = math.exp %39 : vector<8x64xf32>
    %cst_21 = arith.constant 1.000000e+00 : f32
    %41 = vector.broadcast %cst_21 : f32 to vector<8x64xf32>
    %42 = arith.addf %41, %40 : vector<8x64xf32>
    %43 = arith.divf %41, %42 : vector<8x64xf32>
    %44 = vector.extract_strided_slice %43 {offsets = [0, 0], sizes = [8, 32], strides = [1, 1]} : vector<8x64xf32> to vector<8x32xf32>
    %45 = vector.extract_strided_slice %43 {offsets = [0, 32], sizes = [8, 32], strides = [1, 1]} : vector<8x64xf32> to vector<8x32xf32>
    %46 = vector.extract_strided_slice %20 {offsets = [0, 64], sizes = [8, 32], strides = [1, 1]} : vector<8x96xf32> to vector<8x32xf32>
    %47 = vector.extract_strided_slice %35 {offsets = [0, 64], sizes = [8, 32], strides = [1, 1]} : vector<8x96xf32> to vector<8x32xf32>
    %48 = arith.mulf %44, %47 : vector<8x32xf32>
    %49 = arith.addf %46, %48 : vector<8x32xf32>
    %50 = math.tanh %49 : vector<8x32xf32>
    %cst_22 = arith.constant 1.000000e+00 : f32
    %51 = vector.broadcast %cst_22 : f32 to vector<8x32xf32>
    %52 = arith.subf %51, %45 : vector<8x32xf32>
    %53 = arith.mulf %52, %50 : vector<8x32xf32>
    %54 = arith.mulf %45, %32 : vector<8x32xf32>
    %55 = arith.addf %53, %54 : vector<8x32xf32>
    %cst_23 = arith.constant dense<0.000000e+00> : vector<8x96xf32>
    %56 = tpu.matmul %55, %1, %cst_23 {dimension_numbers = #tpu.dot_dimension_numbers<[1], [0], [0], [1], [0, 0, 1, 1], [], []>} : vector<8x32xf32>, vector<32x96xf32>, vector<8x96xf32> -> vector<8x96xf32>
    %57 = vector.broadcast %8 : vector<1x96xf32> to vector<8x96xf32>
    %58 = arith.addf %56, %57 : vector<8x96xf32>
    %59 = vector.extract_strided_slice %21 {offsets = [0, 0], sizes = [8, 64], strides = [1, 1]} : vector<8x96xf32> to vector<8x64xf32>
    %60 = vector.extract_strided_slice %58 {offsets = [0, 0], sizes = [8, 64], strides = [1, 1]} : vector<8x96xf32> to vector<8x64xf32>
    %61 = arith.addf %59, %60 : vector<8x64xf32>
    %62 = arith.negf %61 : vector<8x64xf32>
    %63 = math.exp %62 : vector<8x64xf32>
    %cst_24 = arith.constant 1.000000e+00 : f32
    %64 = vector.broadcast %cst_24 : f32 to vector<8x64xf32>
    %65 = arith.addf %64, %63 : vector<8x64xf32>
    %66 = arith.divf %64, %65 : vector<8x64xf32>
    %67 = vector.extract_strided_slice %66 {offsets = [0, 0], sizes = [8, 32], strides = [1, 1]} : vector<8x64xf32> to vector<8x32xf32>
    %68 = vector.extract_strided_slice %66 {offsets = [0, 32], sizes = [8, 32], strides = [1, 1]} : vector<8x64xf32> to vector<8x32xf32>
    %69 = vector.extract_strided_slice %21 {offsets = [0, 64], sizes = [8, 32], strides = [1, 1]} : vector<8x96xf32> to vector<8x32xf32>
    %70 = vector.extract_strided_slice %58 {offsets = [0, 64], sizes = [8, 32], strides = [1, 1]} : vector<8x96xf32> to vector<8x32xf32>
    %71 = arith.mulf %67, %70 : vector<8x32xf32>
    %72 = arith.addf %69, %71 : vector<8x32xf32>
    %73 = math.tanh %72 : vector<8x32xf32>
    %cst_25 = arith.constant 1.000000e+00 : f32
    %74 = vector.broadcast %cst_25 : f32 to vector<8x32xf32>
    %75 = arith.subf %74, %68 : vector<8x32xf32>
    %76 = arith.mulf %75, %73 : vector<8x32xf32>
    %77 = arith.mulf %68, %55 : vector<8x32xf32>
    %78 = arith.addf %76, %77 : vector<8x32xf32>
    %cst_26 = arith.constant dense<0.000000e+00> : vector<8x96xf32>
    %79 = tpu.matmul %78, %1, %cst_26 {dimension_numbers = #tpu.dot_dimension_numbers<[1], [0], [0], [1], [0, 0, 1, 1], [], []>} : vector<8x32xf32>, vector<32x96xf32>, vector<8x96xf32> -> vector<8x96xf32>
    %80 = vector.broadcast %8 : vector<1x96xf32> to vector<8x96xf32>
    %81 = arith.addf %79, %80 : vector<8x96xf32>
    %82 = vector.extract_strided_slice %22 {offsets = [0, 0], sizes = [8, 64], strides = [1, 1]} : vector<8x96xf32> to vector<8x64xf32>
    %83 = vector.extract_strided_slice %81 {offsets = [0, 0], sizes = [8, 64], strides = [1, 1]} : vector<8x96xf32> to vector<8x64xf32>
    %84 = arith.addf %82, %83 : vector<8x64xf32>
    %85 = arith.negf %84 : vector<8x64xf32>
    %86 = math.exp %85 : vector<8x64xf32>
    %cst_27 = arith.constant 1.000000e+00 : f32
    %87 = vector.broadcast %cst_27 : f32 to vector<8x64xf32>
    %88 = arith.addf %87, %86 : vector<8x64xf32>
    %89 = arith.divf %87, %88 : vector<8x64xf32>
    %90 = vector.extract_strided_slice %89 {offsets = [0, 0], sizes = [8, 32], strides = [1, 1]} : vector<8x64xf32> to vector<8x32xf32>
    %91 = vector.extract_strided_slice %89 {offsets = [0, 32], sizes = [8, 32], strides = [1, 1]} : vector<8x64xf32> to vector<8x32xf32>
    %92 = vector.extract_strided_slice %22 {offsets = [0, 64], sizes = [8, 32], strides = [1, 1]} : vector<8x96xf32> to vector<8x32xf32>
    %93 = vector.extract_strided_slice %81 {offsets = [0, 64], sizes = [8, 32], strides = [1, 1]} : vector<8x96xf32> to vector<8x32xf32>
    %94 = arith.mulf %90, %93 : vector<8x32xf32>
    %95 = arith.addf %92, %94 : vector<8x32xf32>
    %96 = math.tanh %95 : vector<8x32xf32>
    %cst_28 = arith.constant 1.000000e+00 : f32
    %97 = vector.broadcast %cst_28 : f32 to vector<8x32xf32>
    %98 = arith.subf %97, %91 : vector<8x32xf32>
    %99 = arith.mulf %98, %96 : vector<8x32xf32>
    %100 = arith.mulf %91, %78 : vector<8x32xf32>
    %101 = arith.addf %99, %100 : vector<8x32xf32>
    %cst_29 = arith.constant dense<0.000000e+00> : vector<8x96xf32>
    %102 = tpu.matmul %101, %1, %cst_29 {dimension_numbers = #tpu.dot_dimension_numbers<[1], [0], [0], [1], [0, 0, 1, 1], [], []>} : vector<8x32xf32>, vector<32x96xf32>, vector<8x96xf32> -> vector<8x96xf32>
    %103 = vector.broadcast %8 : vector<1x96xf32> to vector<8x96xf32>
    %104 = arith.addf %102, %103 : vector<8x96xf32>
    %105 = vector.extract_strided_slice %23 {offsets = [0, 0], sizes = [8, 64], strides = [1, 1]} : vector<8x96xf32> to vector<8x64xf32>
    %106 = vector.extract_strided_slice %104 {offsets = [0, 0], sizes = [8, 64], strides = [1, 1]} : vector<8x96xf32> to vector<8x64xf32>
    %107 = arith.addf %105, %106 : vector<8x64xf32>
    %108 = arith.negf %107 : vector<8x64xf32>
    %109 = math.exp %108 : vector<8x64xf32>
    %cst_30 = arith.constant 1.000000e+00 : f32
    %110 = vector.broadcast %cst_30 : f32 to vector<8x64xf32>
    %111 = arith.addf %110, %109 : vector<8x64xf32>
    %112 = arith.divf %110, %111 : vector<8x64xf32>
    %113 = vector.extract_strided_slice %112 {offsets = [0, 0], sizes = [8, 32], strides = [1, 1]} : vector<8x64xf32> to vector<8x32xf32>
    %114 = vector.extract_strided_slice %112 {offsets = [0, 32], sizes = [8, 32], strides = [1, 1]} : vector<8x64xf32> to vector<8x32xf32>
    %115 = vector.extract_strided_slice %23 {offsets = [0, 64], sizes = [8, 32], strides = [1, 1]} : vector<8x96xf32> to vector<8x32xf32>
    %116 = vector.extract_strided_slice %104 {offsets = [0, 64], sizes = [8, 32], strides = [1, 1]} : vector<8x96xf32> to vector<8x32xf32>
    %117 = arith.mulf %113, %116 : vector<8x32xf32>
    %118 = arith.addf %115, %117 : vector<8x32xf32>
    %119 = math.tanh %118 : vector<8x32xf32>
    %cst_31 = arith.constant 1.000000e+00 : f32
    %120 = vector.broadcast %cst_31 : f32 to vector<8x32xf32>
    %121 = arith.subf %120, %114 : vector<8x32xf32>
    %122 = arith.mulf %121, %119 : vector<8x32xf32>
    %123 = arith.mulf %114, %101 : vector<8x32xf32>
    %124 = arith.addf %122, %123 : vector<8x32xf32>
    %cst_32 = arith.constant dense<0.000000e+00> : vector<8x96xf32>
    %125 = tpu.matmul %124, %1, %cst_32 {dimension_numbers = #tpu.dot_dimension_numbers<[1], [0], [0], [1], [0, 0, 1, 1], [], []>} : vector<8x32xf32>, vector<32x96xf32>, vector<8x96xf32> -> vector<8x96xf32>
    %126 = vector.broadcast %8 : vector<1x96xf32> to vector<8x96xf32>
    %127 = arith.addf %125, %126 : vector<8x96xf32>
    %128 = vector.extract_strided_slice %24 {offsets = [0, 0], sizes = [8, 64], strides = [1, 1]} : vector<8x96xf32> to vector<8x64xf32>
    %129 = vector.extract_strided_slice %127 {offsets = [0, 0], sizes = [8, 64], strides = [1, 1]} : vector<8x96xf32> to vector<8x64xf32>
    %130 = arith.addf %128, %129 : vector<8x64xf32>
    %131 = arith.negf %130 : vector<8x64xf32>
    %132 = math.exp %131 : vector<8x64xf32>
    %cst_33 = arith.constant 1.000000e+00 : f32
    %133 = vector.broadcast %cst_33 : f32 to vector<8x64xf32>
    %134 = arith.addf %133, %132 : vector<8x64xf32>
    %135 = arith.divf %133, %134 : vector<8x64xf32>
    %136 = vector.extract_strided_slice %135 {offsets = [0, 0], sizes = [8, 32], strides = [1, 1]} : vector<8x64xf32> to vector<8x32xf32>
    %137 = vector.extract_strided_slice %135 {offsets = [0, 32], sizes = [8, 32], strides = [1, 1]} : vector<8x64xf32> to vector<8x32xf32>
    %138 = vector.extract_strided_slice %24 {offsets = [0, 64], sizes = [8, 32], strides = [1, 1]} : vector<8x96xf32> to vector<8x32xf32>
    %139 = vector.extract_strided_slice %127 {offsets = [0, 64], sizes = [8, 32], strides = [1, 1]} : vector<8x96xf32> to vector<8x32xf32>
    %140 = arith.mulf %136, %139 : vector<8x32xf32>
    %141 = arith.addf %138, %140 : vector<8x32xf32>
    %142 = math.tanh %141 : vector<8x32xf32>
    %cst_34 = arith.constant 1.000000e+00 : f32
    %143 = vector.broadcast %cst_34 : f32 to vector<8x32xf32>
    %144 = arith.subf %143, %137 : vector<8x32xf32>
    %145 = arith.mulf %144, %142 : vector<8x32xf32>
    %146 = arith.mulf %137, %124 : vector<8x32xf32>
    %147 = arith.addf %145, %146 : vector<8x32xf32>
    %cst_35 = arith.constant dense<0.000000e+00> : vector<8x96xf32>
    %148 = tpu.matmul %147, %1, %cst_35 {dimension_numbers = #tpu.dot_dimension_numbers<[1], [0], [0], [1], [0, 0, 1, 1], [], []>} : vector<8x32xf32>, vector<32x96xf32>, vector<8x96xf32> -> vector<8x96xf32>
    %149 = vector.broadcast %8 : vector<1x96xf32> to vector<8x96xf32>
    %150 = arith.addf %148, %149 : vector<8x96xf32>
    %151 = vector.extract_strided_slice %25 {offsets = [0, 0], sizes = [8, 64], strides = [1, 1]} : vector<8x96xf32> to vector<8x64xf32>
    %152 = vector.extract_strided_slice %150 {offsets = [0, 0], sizes = [8, 64], strides = [1, 1]} : vector<8x96xf32> to vector<8x64xf32>
    %153 = arith.addf %151, %152 : vector<8x64xf32>
    %154 = arith.negf %153 : vector<8x64xf32>
    %155 = math.exp %154 : vector<8x64xf32>
    %cst_36 = arith.constant 1.000000e+00 : f32
    %156 = vector.broadcast %cst_36 : f32 to vector<8x64xf32>
    %157 = arith.addf %156, %155 : vector<8x64xf32>
    %158 = arith.divf %156, %157 : vector<8x64xf32>
    %159 = vector.extract_strided_slice %158 {offsets = [0, 0], sizes = [8, 32], strides = [1, 1]} : vector<8x64xf32> to vector<8x32xf32>
    %160 = vector.extract_strided_slice %158 {offsets = [0, 32], sizes = [8, 32], strides = [1, 1]} : vector<8x64xf32> to vector<8x32xf32>
    %161 = vector.extract_strided_slice %25 {offsets = [0, 64], sizes = [8, 32], strides = [1, 1]} : vector<8x96xf32> to vector<8x32xf32>
    %162 = vector.extract_strided_slice %150 {offsets = [0, 64], sizes = [8, 32], strides = [1, 1]} : vector<8x96xf32> to vector<8x32xf32>
    %163 = arith.mulf %159, %162 : vector<8x32xf32>
    %164 = arith.addf %161, %163 : vector<8x32xf32>
    %165 = math.tanh %164 : vector<8x32xf32>
    %cst_37 = arith.constant 1.000000e+00 : f32
    %166 = vector.broadcast %cst_37 : f32 to vector<8x32xf32>
    %167 = arith.subf %166, %160 : vector<8x32xf32>
    %168 = arith.mulf %167, %165 : vector<8x32xf32>
    %169 = arith.mulf %160, %147 : vector<8x32xf32>
    %170 = arith.addf %168, %169 : vector<8x32xf32>
    %cst_38 = arith.constant dense<0.000000e+00> : vector<8x96xf32>
    %171 = tpu.matmul %170, %1, %cst_38 {dimension_numbers = #tpu.dot_dimension_numbers<[1], [0], [0], [1], [0, 0, 1, 1], [], []>} : vector<8x32xf32>, vector<32x96xf32>, vector<8x96xf32> -> vector<8x96xf32>
    %172 = vector.broadcast %8 : vector<1x96xf32> to vector<8x96xf32>
    %173 = arith.addf %171, %172 : vector<8x96xf32>
    %174 = vector.extract_strided_slice %26 {offsets = [0, 0], sizes = [8, 64], strides = [1, 1]} : vector<8x96xf32> to vector<8x64xf32>
    %175 = vector.extract_strided_slice %173 {offsets = [0, 0], sizes = [8, 64], strides = [1, 1]} : vector<8x96xf32> to vector<8x64xf32>
    %176 = arith.addf %174, %175 : vector<8x64xf32>
    %177 = arith.negf %176 : vector<8x64xf32>
    %178 = math.exp %177 : vector<8x64xf32>
    %cst_39 = arith.constant 1.000000e+00 : f32
    %179 = vector.broadcast %cst_39 : f32 to vector<8x64xf32>
    %180 = arith.addf %179, %178 : vector<8x64xf32>
    %181 = arith.divf %179, %180 : vector<8x64xf32>
    %182 = vector.extract_strided_slice %181 {offsets = [0, 0], sizes = [8, 32], strides = [1, 1]} : vector<8x64xf32> to vector<8x32xf32>
    %183 = vector.extract_strided_slice %181 {offsets = [0, 32], sizes = [8, 32], strides = [1, 1]} : vector<8x64xf32> to vector<8x32xf32>
    %184 = vector.extract_strided_slice %26 {offsets = [0, 64], sizes = [8, 32], strides = [1, 1]} : vector<8x96xf32> to vector<8x32xf32>
    %185 = vector.extract_strided_slice %173 {offsets = [0, 64], sizes = [8, 32], strides = [1, 1]} : vector<8x96xf32> to vector<8x32xf32>
    %186 = arith.mulf %182, %185 : vector<8x32xf32>
    %187 = arith.addf %184, %186 : vector<8x32xf32>
    %188 = math.tanh %187 : vector<8x32xf32>
    %cst_40 = arith.constant 1.000000e+00 : f32
    %189 = vector.broadcast %cst_40 : f32 to vector<8x32xf32>
    %190 = arith.subf %189, %183 : vector<8x32xf32>
    %191 = arith.mulf %190, %188 : vector<8x32xf32>
    %192 = arith.mulf %183, %170 : vector<8x32xf32>
    %193 = arith.addf %191, %192 : vector<8x32xf32>
    %cst_41 = arith.constant dense<0.000000e+00> : vector<8x96xf32>
    %194 = tpu.matmul %193, %1, %cst_41 {dimension_numbers = #tpu.dot_dimension_numbers<[1], [0], [0], [1], [0, 0, 1, 1], [], []>} : vector<8x32xf32>, vector<32x96xf32>, vector<8x96xf32> -> vector<8x96xf32>
    %195 = vector.broadcast %8 : vector<1x96xf32> to vector<8x96xf32>
    %196 = arith.addf %194, %195 : vector<8x96xf32>
    %197 = vector.extract_strided_slice %27 {offsets = [0, 0], sizes = [8, 64], strides = [1, 1]} : vector<8x96xf32> to vector<8x64xf32>
    %198 = vector.extract_strided_slice %196 {offsets = [0, 0], sizes = [8, 64], strides = [1, 1]} : vector<8x96xf32> to vector<8x64xf32>
    %199 = arith.addf %197, %198 : vector<8x64xf32>
    %200 = arith.negf %199 : vector<8x64xf32>
    %201 = math.exp %200 : vector<8x64xf32>
    %cst_42 = arith.constant 1.000000e+00 : f32
    %202 = vector.broadcast %cst_42 : f32 to vector<8x64xf32>
    %203 = arith.addf %202, %201 : vector<8x64xf32>
    %204 = arith.divf %202, %203 : vector<8x64xf32>
    %205 = vector.extract_strided_slice %204 {offsets = [0, 0], sizes = [8, 32], strides = [1, 1]} : vector<8x64xf32> to vector<8x32xf32>
    %206 = vector.extract_strided_slice %204 {offsets = [0, 32], sizes = [8, 32], strides = [1, 1]} : vector<8x64xf32> to vector<8x32xf32>
    %207 = vector.extract_strided_slice %27 {offsets = [0, 64], sizes = [8, 32], strides = [1, 1]} : vector<8x96xf32> to vector<8x32xf32>
    %208 = vector.extract_strided_slice %196 {offsets = [0, 64], sizes = [8, 32], strides = [1, 1]} : vector<8x96xf32> to vector<8x32xf32>
    %209 = arith.mulf %205, %208 : vector<8x32xf32>
    %210 = arith.addf %207, %209 : vector<8x32xf32>
    %211 = math.tanh %210 : vector<8x32xf32>
    %cst_43 = arith.constant 1.000000e+00 : f32
    %212 = vector.broadcast %cst_43 : f32 to vector<8x32xf32>
    %213 = arith.subf %212, %206 : vector<8x32xf32>
    %214 = arith.mulf %213, %211 : vector<8x32xf32>
    %215 = arith.mulf %206, %193 : vector<8x32xf32>
    %216 = arith.addf %214, %215 : vector<8x32xf32>
    %cst_44 = arith.constant dense<0.000000e+00> : vector<8x96xf32>
    %217 = tpu.matmul %216, %1, %cst_44 {dimension_numbers = #tpu.dot_dimension_numbers<[1], [0], [0], [1], [0, 0, 1, 1], [], []>} : vector<8x32xf32>, vector<32x96xf32>, vector<8x96xf32> -> vector<8x96xf32>
    %218 = vector.broadcast %8 : vector<1x96xf32> to vector<8x96xf32>
    %219 = arith.addf %217, %218 : vector<8x96xf32>
    %220 = vector.extract_strided_slice %28 {offsets = [0, 0], sizes = [8, 64], strides = [1, 1]} : vector<8x96xf32> to vector<8x64xf32>
    %221 = vector.extract_strided_slice %219 {offsets = [0, 0], sizes = [8, 64], strides = [1, 1]} : vector<8x96xf32> to vector<8x64xf32>
    %222 = arith.addf %220, %221 : vector<8x64xf32>
    %223 = arith.negf %222 : vector<8x64xf32>
    %224 = math.exp %223 : vector<8x64xf32>
    %cst_45 = arith.constant 1.000000e+00 : f32
    %225 = vector.broadcast %cst_45 : f32 to vector<8x64xf32>
    %226 = arith.addf %225, %224 : vector<8x64xf32>
    %227 = arith.divf %225, %226 : vector<8x64xf32>
    %228 = vector.extract_strided_slice %227 {offsets = [0, 0], sizes = [8, 32], strides = [1, 1]} : vector<8x64xf32> to vector<8x32xf32>
    %229 = vector.extract_strided_slice %227 {offsets = [0, 32], sizes = [8, 32], strides = [1, 1]} : vector<8x64xf32> to vector<8x32xf32>
    %230 = vector.extract_strided_slice %28 {offsets = [0, 64], sizes = [8, 32], strides = [1, 1]} : vector<8x96xf32> to vector<8x32xf32>
    %231 = vector.extract_strided_slice %219 {offsets = [0, 64], sizes = [8, 32], strides = [1, 1]} : vector<8x96xf32> to vector<8x32xf32>
    %232 = arith.mulf %228, %231 : vector<8x32xf32>
    %233 = arith.addf %230, %232 : vector<8x32xf32>
    %234 = math.tanh %233 : vector<8x32xf32>
    %cst_46 = arith.constant 1.000000e+00 : f32
    %235 = vector.broadcast %cst_46 : f32 to vector<8x32xf32>
    %236 = arith.subf %235, %229 : vector<8x32xf32>
    %237 = arith.mulf %236, %234 : vector<8x32xf32>
    %238 = arith.mulf %229, %216 : vector<8x32xf32>
    %239 = arith.addf %237, %238 : vector<8x32xf32>
    %cst_47 = arith.constant dense<0.000000e+00> : vector<8x96xf32>
    %240 = tpu.matmul %239, %1, %cst_47 {dimension_numbers = #tpu.dot_dimension_numbers<[1], [0], [0], [1], [0, 0, 1, 1], [], []>} : vector<8x32xf32>, vector<32x96xf32>, vector<8x96xf32> -> vector<8x96xf32>
    %241 = vector.broadcast %8 : vector<1x96xf32> to vector<8x96xf32>
    %242 = arith.addf %240, %241 : vector<8x96xf32>
    %243 = vector.extract_strided_slice %29 {offsets = [0, 0], sizes = [8, 64], strides = [1, 1]} : vector<8x96xf32> to vector<8x64xf32>
    %244 = vector.extract_strided_slice %242 {offsets = [0, 0], sizes = [8, 64], strides = [1, 1]} : vector<8x96xf32> to vector<8x64xf32>
    %245 = arith.addf %243, %244 : vector<8x64xf32>
    %246 = arith.negf %245 : vector<8x64xf32>
    %247 = math.exp %246 : vector<8x64xf32>
    %cst_48 = arith.constant 1.000000e+00 : f32
    %248 = vector.broadcast %cst_48 : f32 to vector<8x64xf32>
    %249 = arith.addf %248, %247 : vector<8x64xf32>
    %250 = arith.divf %248, %249 : vector<8x64xf32>
    %251 = vector.extract_strided_slice %250 {offsets = [0, 0], sizes = [8, 32], strides = [1, 1]} : vector<8x64xf32> to vector<8x32xf32>
    %252 = vector.extract_strided_slice %250 {offsets = [0, 32], sizes = [8, 32], strides = [1, 1]} : vector<8x64xf32> to vector<8x32xf32>
    %253 = vector.extract_strided_slice %29 {offsets = [0, 64], sizes = [8, 32], strides = [1, 1]} : vector<8x96xf32> to vector<8x32xf32>
    %254 = vector.extract_strided_slice %242 {offsets = [0, 64], sizes = [8, 32], strides = [1, 1]} : vector<8x96xf32> to vector<8x32xf32>
    %255 = arith.mulf %251, %254 : vector<8x32xf32>
    %256 = arith.addf %253, %255 : vector<8x32xf32>
    %257 = math.tanh %256 : vector<8x32xf32>
    %cst_49 = arith.constant 1.000000e+00 : f32
    %258 = vector.broadcast %cst_49 : f32 to vector<8x32xf32>
    %259 = arith.subf %258, %252 : vector<8x32xf32>
    %260 = arith.mulf %259, %257 : vector<8x32xf32>
    %261 = arith.mulf %252, %239 : vector<8x32xf32>
    %262 = arith.addf %260, %261 : vector<8x32xf32>
    %cst_50 = arith.constant dense<0.000000e+00> : vector<8x96xf32>
    %263 = tpu.matmul %262, %1, %cst_50 {dimension_numbers = #tpu.dot_dimension_numbers<[1], [0], [0], [1], [0, 0, 1, 1], [], []>} : vector<8x32xf32>, vector<32x96xf32>, vector<8x96xf32> -> vector<8x96xf32>
    %264 = vector.broadcast %8 : vector<1x96xf32> to vector<8x96xf32>
    %265 = arith.addf %263, %264 : vector<8x96xf32>
    %266 = vector.extract_strided_slice %30 {offsets = [0, 0], sizes = [8, 64], strides = [1, 1]} : vector<8x96xf32> to vector<8x64xf32>
    %267 = vector.extract_strided_slice %265 {offsets = [0, 0], sizes = [8, 64], strides = [1, 1]} : vector<8x96xf32> to vector<8x64xf32>
    %268 = arith.addf %266, %267 : vector<8x64xf32>
    %269 = arith.negf %268 : vector<8x64xf32>
    %270 = math.exp %269 : vector<8x64xf32>
    %cst_51 = arith.constant 1.000000e+00 : f32
    %271 = vector.broadcast %cst_51 : f32 to vector<8x64xf32>
    %272 = arith.addf %271, %270 : vector<8x64xf32>
    %273 = arith.divf %271, %272 : vector<8x64xf32>
    %274 = vector.extract_strided_slice %273 {offsets = [0, 0], sizes = [8, 32], strides = [1, 1]} : vector<8x64xf32> to vector<8x32xf32>
    %275 = vector.extract_strided_slice %273 {offsets = [0, 32], sizes = [8, 32], strides = [1, 1]} : vector<8x64xf32> to vector<8x32xf32>
    %276 = vector.extract_strided_slice %30 {offsets = [0, 64], sizes = [8, 32], strides = [1, 1]} : vector<8x96xf32> to vector<8x32xf32>
    %277 = vector.extract_strided_slice %265 {offsets = [0, 64], sizes = [8, 32], strides = [1, 1]} : vector<8x96xf32> to vector<8x32xf32>
    %278 = arith.mulf %274, %277 : vector<8x32xf32>
    %279 = arith.addf %276, %278 : vector<8x32xf32>
    %280 = math.tanh %279 : vector<8x32xf32>
    %cst_52 = arith.constant 1.000000e+00 : f32
    %281 = vector.broadcast %cst_52 : f32 to vector<8x32xf32>
    %282 = arith.subf %281, %275 : vector<8x32xf32>
    %283 = arith.mulf %282, %280 : vector<8x32xf32>
    %284 = arith.mulf %275, %262 : vector<8x32xf32>
    %285 = arith.addf %283, %284 : vector<8x32xf32>
    %cst_53 = arith.constant dense<0.000000e+00> : vector<8x96xf32>
    %286 = tpu.matmul %285, %1, %cst_53 {dimension_numbers = #tpu.dot_dimension_numbers<[1], [0], [0], [1], [0, 0, 1, 1], [], []>} : vector<8x32xf32>, vector<32x96xf32>, vector<8x96xf32> -> vector<8x96xf32>
    %287 = vector.broadcast %8 : vector<1x96xf32> to vector<8x96xf32>
    %288 = arith.addf %286, %287 : vector<8x96xf32>
    %289 = vector.extract_strided_slice %31 {offsets = [0, 0], sizes = [8, 64], strides = [1, 1]} : vector<8x96xf32> to vector<8x64xf32>
    %290 = vector.extract_strided_slice %288 {offsets = [0, 0], sizes = [8, 64], strides = [1, 1]} : vector<8x96xf32> to vector<8x64xf32>
    %291 = arith.addf %289, %290 : vector<8x64xf32>
    %292 = arith.negf %291 : vector<8x64xf32>
    %293 = math.exp %292 : vector<8x64xf32>
    %cst_54 = arith.constant 1.000000e+00 : f32
    %294 = vector.broadcast %cst_54 : f32 to vector<8x64xf32>
    %295 = arith.addf %294, %293 : vector<8x64xf32>
    %296 = arith.divf %294, %295 : vector<8x64xf32>
    %297 = vector.extract_strided_slice %296 {offsets = [0, 0], sizes = [8, 32], strides = [1, 1]} : vector<8x64xf32> to vector<8x32xf32>
    %298 = vector.extract_strided_slice %296 {offsets = [0, 32], sizes = [8, 32], strides = [1, 1]} : vector<8x64xf32> to vector<8x32xf32>
    %299 = vector.extract_strided_slice %31 {offsets = [0, 64], sizes = [8, 32], strides = [1, 1]} : vector<8x96xf32> to vector<8x32xf32>
    %300 = vector.extract_strided_slice %288 {offsets = [0, 64], sizes = [8, 32], strides = [1, 1]} : vector<8x96xf32> to vector<8x32xf32>
    %301 = arith.mulf %297, %300 : vector<8x32xf32>
    %302 = arith.addf %299, %301 : vector<8x32xf32>
    %303 = math.tanh %302 : vector<8x32xf32>
    %cst_55 = arith.constant 1.000000e+00 : f32
    %304 = vector.broadcast %cst_55 : f32 to vector<8x32xf32>
    %305 = arith.subf %304, %298 : vector<8x32xf32>
    %306 = arith.mulf %305, %303 : vector<8x32xf32>
    %307 = arith.mulf %298, %285 : vector<8x32xf32>
    %308 = arith.addf %306, %307 : vector<8x32xf32>
    %309 = tpu.concatenate %55, %78, %101, %124, %147, %170, %193, %216, %239, %262, %285, %308 in 0 : vector<8x32xf32>, vector<8x32xf32>, vector<8x32xf32>, vector<8x32xf32>, vector<8x32xf32>, vector<8x32xf32>, vector<8x32xf32>, vector<8x32xf32>, vector<8x32xf32>, vector<8x32xf32>, vector<8x32xf32>, vector<8x32xf32> -> vector<96x32xf32>
    %cst_56 = arith.constant dense<0.000000e+00> : vector<64x32xf32>
    %310 = tpu.matmul %14, %6, %cst_56 {dimension_numbers = #tpu.dot_dimension_numbers<[1], [0], [0], [1], [0, 0, 1, 1], [], []>} : vector<64x4xf32>, vector<4x32xf32>, vector<64x32xf32> -> vector<64x32xf32>
    %311 = vector.broadcast %9 : vector<1x32xf32> to vector<64x32xf32>
    %312 = arith.addf %310, %311 : vector<64x32xf32>
    %c0_57 = arith.constant 0 : index
    %313 = memref.load %arg2[%c0_57] : memref<2xf32, #tpu.memory_space<smem>>
    %314 = vector.extract_strided_slice %309 {offsets = [0, 0], sizes = [64, 32], strides = [1, 1]} : vector<96x32xf32> to vector<64x32xf32>
    %315 = vector.broadcast %313 : f32 to vector<64x32xf32>
    %316 = arith.mulf %315, %314 : vector<64x32xf32>
    %c1 = arith.constant 1 : index
    %317 = memref.load %arg2[%c1] : memref<2xf32, #tpu.memory_space<smem>>
    %318 = vector.broadcast %317 : f32 to vector<64x32xf32>
    %319 = arith.mulf %318, %312 : vector<64x32xf32>
    %320 = arith.addf %316, %319 : vector<64x32xf32>
    %321 = vector.extract_strided_slice %309 {offsets = [64, 0], sizes = [32, 32], strides = [1, 1]} : vector<96x32xf32> to vector<32x32xf32>
    %322 = tpu.concatenate %320, %321 in 0 : vector<64x32xf32>, vector<32x32xf32> -> vector<96x32xf32>
    %cst_58 = arith.constant dense<0.000000e+00> : vector<96x32xf32>
    %323 = tpu.matmul %322, %2, %cst_58 {dimension_numbers = #tpu.dot_dimension_numbers<[1], [0], [0], [1], [0, 0, 1, 1], [], []>} : vector<96x32xf32>, vector<32x32xf32>, vector<96x32xf32> -> vector<96x32xf32>
    %324 = vector.broadcast %10 : vector<1x32xf32> to vector<96x32xf32>
    %325 = arith.addf %323, %324 : vector<96x32xf32>
    %cst_59 = arith.constant dense<0.000000e+00> : vector<96x32xf32>
    %326 = tpu.matmul %15, %3, %cst_59 {dimension_numbers = #tpu.dot_dimension_numbers<[1], [0], [0], [1], [0, 0, 1, 1], [], []>} : vector<96x4xf32>, vector<4x32xf32>, vector<96x32xf32> -> vector<96x32xf32>
    %cst_60 = arith.constant dense<0.000000e+00> : vector<96x32xf32>
    %327 = tpu.matmul %325, %4, %cst_60 {dimension_numbers = #tpu.dot_dimension_numbers<[1], [0], [0], [1], [0, 0, 1, 1], [], []>} : vector<96x32xf32>, vector<32x32xf32>, vector<96x32xf32> -> vector<96x32xf32>
    %328 = arith.addf %326, %327 : vector<96x32xf32>
    %329 = vector.broadcast %11 : vector<1x32xf32> to vector<96x32xf32>
    %330 = arith.addf %328, %329 : vector<96x32xf32>
    %cst_61 = arith.constant 0.000000e+00 : f32
    %331 = vector.broadcast %cst_61 : f32 to vector<96x32xf32>
    %332 = arith.maximumf %330, %331 : vector<96x32xf32>
    %cst_62 = arith.constant dense<0.000000e+00> : vector<96x4xf32>
    %333 = tpu.matmul %332, %5, %cst_62 {dimension_numbers = #tpu.dot_dimension_numbers<[1], [0], [0], [1], [0, 0, 1, 1], [], []>} : vector<96x32xf32>, vector<32x4xf32>, vector<96x4xf32> -> vector<96x4xf32>
    %334 = vector.broadcast %12 : vector<1x4xf32> to vector<96x4xf32>
    %335 = arith.addf %333, %334 : vector<96x4xf32>
    %336 = arith.subf %16, %335 : vector<96x4xf32>
    %337 = arith.mulf %336, %336 : vector<96x4xf32>
    %cst_63 = arith.constant dense<0.000000e+00> : vector<96xf32>
    %338 = vector.multi_reduction <add>, %337, %cst_63 [1] : vector<96x4xf32> to vector<96xf32>
    %339 = vector.shape_cast %338 : vector<96xf32> to vector<96x1xf32>
    %cst_64 = arith.constant 4.000000e+00 : f32
    %340 = vector.broadcast %cst_64 : f32 to vector<96x1xf32>
    %341 = arith.divf %339, %340 : vector<96x1xf32>
    %cst_65 = arith.constant 0.000000e+00 : f32
    %342 = vector.broadcast %cst_65 : f32 to vector<96x95xf32>
    %343 = tpu.concatenate %325, %341, %342 in 1 : vector<96x32xf32>, vector<96x1xf32>, vector<96x95xf32> -> vector<96x128xf32>
    %c0_66 = arith.constant 0 : index
    %c0_67 = arith.constant 0 : index
    %344 = vector.load %arg3[%c0_66, %c0_67] : memref<96x128xf32, #tpu.memory_space<vmem>>, vector<96x128xf32>
    tpu.vector_store %arg3[%c0_66, %c0_67], %343 {strides = array<i32>} : memref<96x128xf32, #tpu.memory_space<vmem>>, vector<96x128xf32>,
    return
  }
}

</mosaic_0001>

<bundles_post_ra>
// kernel: forward.1
= control target key start
LH: loop header
LB: loop body
LE: loop exit
PB: predicated region body
PF: predicated region fallthrough
CT: control target
= control target key end

     0   :  { %8 = vsyncpa [#allocation3], 0  ;;  %s3913_s0 = inlined_call_operand.vmem [shape: f32[168,96], index: 0, kind: input, shape index: {}]   ;;  %s3914_s1 = inlined_call_operand.vmem [shape: f32[352,16], index: 1, kind: input, shape index: {}]   ;;  %s3915_s2 = inlined_call_operand.vmem [shape: f32[2], index: 2, kind: input, shape index: {}]   ;;  %s3916_s3 = inlined_call_operand.vmem [shape: f32[96,128], index: 3, kind: output, shape index: {}]  }
   0x1   :  { %s19_s14 = sshll.u32 %s3915_s2, 4  ;;  %s20_s14 = int_to_ptr.vmem [resolvable:$true] %s19_s14 }
   0x2   :  { %s3186_s15 = scalar_lea.vmem %s20_s14, 16  ;;  %p3191_p1 = scmp.lt.s32.totalorder %s20_s14, %s20_s14 }
   0x3   :  { %p3187_p0 = scmp.ne.s32.totalorder %s20_s14, %s3186_s15  ;;  %p3192_p2 = scmp.lt.s32.totalorder %s3186_s15, %s3186_s15 }
   0x5   :  { %p3193_p3 = por %p3192_p2, %p3191_p1 }
   0x7   :  { %p3194_p4 = pnand %p3193_p3, %p3187_p0 }
   0x9   :  { %3197 = shalt.err (!%p3194_p4)
}
   0xa   :  { %s3200_s16 = smov [#allocation2]  }
   0xb   :  { %22 = dma.vmem_to_smem %s20_s14, 16, %s3200_s16, [#allocation3]  }
   0xc   :  { %3198 = dma.done.wait [#allocation3], 16  }
   0xd   :  { %3199 = vsyncadd [#allocation3], 4294967280 }
   0xe   :  { %26 = sfence }
   0xf   :  { %v29_v0 = vld [vmem:[%s3913_s0 + $0x10] sm:$0xff]  ;;  %v30_v1 = vld [vmem:[%s3913_s0 + $0x18] sm:$0xff]  ;;  %v27_v2 = vld [vmem:[%s3913_s0] sm:$0xff]  ;;  %vm101_vm0 = vcmask 130048   ;;  %v3201_v3 = vmov 0.0|0.0   ;;  %vm3202_vm1 = vmmov 0  }
  0x10   :  { %2997 = vmatprep.subr.bf16.mxu1 %v3201_v3  ;;  %v3240_v4 = vpack.c.bf16 %v30_v1, %v29_v0  ;;  %v28_v5 = vld [vmem:[%s3913_s0 + $0x8] sm:$0xff]  ;;  %v31_v6 = vld [vmem:[%s3913_s0 + $0x20] sm:$0xff]  ;;  %v3203_v10 = vmov 0.0   ;;  %s3204_s7 = smov 64   ;;  %s3205_s10 = smov 96   ;;  %vm267_vm2 = vcmask 261120  }
  0x11   :  { %v32_v7 = vld [vmem:[%s3913_s0 + $0x28] sm:$0xff]  ;;  %v2993_v8 = vpack.c.bf16 %v28_v5, %v27_v2  ;;  %v53_v9 = vld [vmem:[%s3914_s1] sm:$0xff]  ;;  %2757 = vmatprep.mubr.msk.f32.mxu1 %vm3202_vm1, %v3203_v10  ;;  %v55_v50 = vld [vmem:[%s3914_s1 + $0x10] sm:$0xff]  ;;  %vm1507_vm3 = vcmask 1043456   ;;  %vm1482_vm4 = vcmask 31744   ;;  %s2530_s22 = sld [smem:[#allocation2 + $0x1]] }
  0x12   :  { %2999 = vmatpush3.bf16.msra.mxu1 %v3240_v4  ;;  %v3257_v11 = vpack.c.bf16 %v32_v7, %v31_v6  ;;  %2731 = vmatprep.mubr.msk.f32.mxu0 %vm101_vm0, %v53_v9  ;;  %v54_v12 = vld [vmem:[%s3914_s1 + $0x8] sm:$0xff]  ;;  %v3282_v14 = vld [vmem:[%s3913_s0 + $0xa1] ss:$0 sm:$0xff]  ;;  %v3289_v19 = vld [vmem:[%s3913_s0 + $0xa0] ss:$0 sm:$0xff]  ;;  %s3206_s25 = smov 32  }
  0x13   :  { %2994 = vmatprep.subr.bf16.mxu0 %v2993_v8  ;;  %3000 = vmatprep.subr.bf16.mxu1 %v3201_v3  ;;  %v56_v51 = vld [vmem:[%s3914_s1 + $0x18] sm:$0xff]  ;;  %s1616_s26 = sld [smem:[#allocation2]]  ;;  %vm2453_vm5 = vcmask 269312  }
  0x14   :  { %2996 = vmatpush3.bf16.msra.mxu0 %v2993_v8 }
  0x15   :  { %3015 = vmatprep.subr.bf16.mxu0 %v3201_v3 }
  0x16   :  { %3002 = vmatpush3.bf16.msra.mxu1 %v3257_v11 }
  0x17   :  { %2732 = vmatmul.mubr.msk.f32.vlgmr.msra.gmra.mrb[0].mxu0 %vm101_vm0, %v54_v12  ;;  %3003 = vmatprep.subr.bf16.mxu1 %v3201_v3 }
  0x18   :  { %3017 = vmatpush3.bf16.msra.mxu0 %v3240_v4  ;;  %2734 = vmatprep.mubr.msk.f32.mxu0 %vm101_vm0, %v55_v50 }
  0x19   :  { %2758 = vmatmul.mubr.f32.vlgmr.msra.gmra.mrb[0].mxu1 %v3203_v10  ;;  %3018 = vmatprep.subr.bf16.mxu0 %v3201_v3 }
  0x1a   :  { %3005 = vmatpush3.bf16.msra.mxu1 %v3240_v4  ;;  %2768 = vmatprep.mubr.msk.f32.mxu1 %vm3202_vm1, %v3203_v10 }
  0x1b   :  { %3006 = vmatprep.subr.bf16.mxu1 %v3201_v3  ;;  %2735 = vmatmul.mubr.msk.f32.gmra.mrb[2].mxu0 %vm101_vm0, %v56_v51 }
  0x1c   :  { %3020 = vmatpush3.bf16.msra.mxu0 %v3257_v11 }
  0x1d   :  { %3027 = vmatprep.subr.bf16.mxu0 %v3201_v3 }
  0x1e   :  { %3008 = vmatpush3.bf16.msra.mxu1 %v3257_v11 }
  0x1f   :  { %3009 = vmatprep.subr.bf16.mxu1 %v3201_v3 }
  0xea   :  { %v2733_v13 = vpop.f32.mrb[0].mxu0 }
  0xeb   :  { %v204_v15 = vpop.f32.mrb[1].mxu0  ;;  %v210_v40 = vadd.f32 %v2733_v13, %v3289_v19 }
  0xec   :  { %v337_v16 = vpop.f32.mrb[0].mxu1  ;;  %v205_v20 = vadd.f32 %v3289_v19, %v204_v15  ;;  %v57_v15 = vld [vmem:[%s3914_s1 + $0x20] sm:$0xff] }
  0xed   :  { %v338_v17 = vadd.f32 %v3282_v14, %v337_v16  ;;  %v2759_v18 = vpop.f32.mrb[1].mxu1  ;;  %v58_v16 = vld [vmem:[%s3914_s1 + $0x28] sm:$0xff]  ;;  %2737 = vmatprep.mubr.msk.f32.mxu0 %vm101_vm0, %v57_v15 }
  0xee   :  { %v3323_v58 = vpop.f32.mrb[2].mxu0  ;;  %2738 = vmatmul.mubr.msk.f32.gmra.mrb[4].mxu0 %vm101_vm0, %v58_v16  ;;  %v60_v18 = vld [vmem:[%s3914_s1 + $0x38] sm:$0xff] }
  0xef   :  { %349 = vrot.lane.b32.xlu0 %v338_v17, %s3204_s7  ;;  %v341_v21 = vadd.f32 %v338_v17, %v205_v20  ;;  %v214_v59 = vpop.f32.mrb[3].mxu0  ;;  %v59_v17 = vld [vmem:[%s3914_s1 + $0x30] sm:$0xff] }
  0xf0   :  { %v215_v0 = vadd.f32 %v3289_v19, %v214_v59  ;;  %2740 = vmatprep.mubr.msk.f32.mxu0 %vm101_vm0, %v59_v17 }
  0xf1   :  { %v2497_v22 = vmul.f32 -1.442695, %v341_v21  ;;  %v62_v21 = vld [vmem:[%s3914_s1 + $0x48] sm:$0xff] }
  0xf2   :  { %2741 = vmatmul.mubr.msk.f32.gmra.mrb[6].mxu0 %vm101_vm0, %v60_v18 }
  0xf3   :  { %3114 = vpow2.f32 %v2497_v22 }
  0xfd   :  { %v3115_v23 = vpop.eup %3114 }
  0xfe   :  { %v345_v24 = vadd.f32 1.0, %v3115_v23  ;;  %v63_v23 = vld [vmem:[%s3914_s1 + $0x50] sm:$0xff] }
 0x100   :  { %3116 = vrcp.f32 %v345_v24  ;;  %v64_v24 = vld [vmem:[%s3914_s1 + $0x58] sm:$0xff] }
 0x10a   :  { %v3117_v25 = vpop.eup %3116 }
 0x10b   :  { %v359_v31 = vsub.f32 1.0, %v3117_v25  ;;  %v365_v33 = vmul.f32 0.0, %v3117_v25 }
 0x161   :  { %v350_v26 = vpop.permute.xlu0 %349 }
 0x162   :  { %v352_v27 = vmul.f32 %v3117_v25, %v350_v26 }
 0x164   :  { %354 = vrot.lane.b32.xlu0 %v352_v27, %s3204_s7 }
 0x1d6   :  { %v355_v28 = vpop.permute.xlu0 %354 }
 0x1d7   :  { %v357_v29 = vadd.f32 %v355_v28, %v205_v20  ;;  %v61_v20 = vld [vmem:[%s3914_s1 + $0x40] sm:$0xff] }
 0x1d8   :  { %2743 = vmatprep.mubr.msk.f32.mxu0 %vm101_vm0, %v61_v20 }
 0x1d9   :  { %3118 = vtanh.f32 %v357_v29  ;;  %2744 = vmatmul.mubr.msk.f32.gmra.mrb[8].mxu0 %vm101_vm0, %v62_v21 }
 0x1da   :  { %2746 = vmatprep.mubr.msk.f32.mxu0 %vm101_vm0, %v63_v23 }
 0x1dd   :  { %2747 = vmatmul.mubr.msk.f32.gmra.mrb[10].mxu0 %vm101_vm0, %v64_v24 }
 0x1de   :  { %2790 = vmatprep.mubr.msk.f32.mxu0 %vm3202_vm1, %v3203_v10 }
 0x1e3   :  { %v3119_v30 = vpop.eup %3118 }
 0x1e4   :  { %361 = vrot.lane.b32.xlu1 %v3119_v30, %s3205_s10  ;;  %v3376_v30 = vpop.f32.mrb[4].mxu0 }
 0x256   :  { %v362_v32 = vpop.permute.xlu1 %361 }
 0x257   :  { %v364_v34 = vmul.f32 %v362_v32, %v359_v31  ;;  %v224_v31 = vpop.f32.mrb[5].mxu0 }
 0x258   :  { %v3378_v32 = vpop.f32.mrb[6].mxu0 }
 0x259   :  { %v3294_v35 = vadd.f32 %v365_v33, %v364_v34  ;;  %v3380_v33 = vpop.f32.mrb[7].mxu0 }
 0x25b   :  { %368 = vrot.lane.b32.xlu1 %v3294_v35, %s3205_s10 }
 0x2ac   :  { %v3382_v34 = vpop.f32.mrb[8].mxu0 }
 0x2cd   :  { %v369_v36 = vpop.permute.xlu1 %368 }
 0x2ce   :  { %2769 = vmatmul.mubr.msk.f32.vlgmr.msra.gmra.mrb[2].mxu1 %vm267_vm2, %v369_v36  ;;  %v3384_v36 = vpop.f32.mrb[9].mxu0 }
 0x2cf   :  { %3011 = vmatpush3.bf16.msra.mxu1 %v3240_v4  ;;  %2779 = vmatprep.mubr.msk.f32.mxu1 %vm3202_vm1, %v3203_v10 }
 0x2d0   :  { %3012 = vmatprep.subr.bf16.mxu1 %v3201_v3 }
 0x2d3   :  { %3014 = vmatpush3.bf16.msra.mxu1 %v3257_v11 }
 0x2d4   :  { %3021 = vmatprep.subr.bf16.mxu1 %v3201_v3 }
 0x3a1   :  { %v438_v37 = vpop.f32.mrb[2].mxu1 }
 0x3a2   :  { %v439_v38 = vadd.f32 %v3282_v14, %v438_v37  ;;  %v2770_v39 = vpop.f32.mrb[3].mxu1  ;;  %v3386_v37 = vpop.f32.mrb[10].mxu0 }
 0x3a4   :  { %450 = vrot.lane.b32.xlu0 %v439_v38, %s3204_s7  ;;  %v442_v41 = vadd.f32 %v439_v38, %v210_v40  ;;  %v3388_v38 = vpop.f32.mrb[11].mxu0 }
 0x3a6   :  { %v2499_v42 = vmul.f32 -1.442695, %v442_v41 }
 0x3a8   :  { %3120 = vpow2.f32 %v2499_v42 }
 0x3b2   :  { %v3121_v43 = vpop.eup %3120 }
 0x3b3   :  { %v446_v44 = vadd.f32 1.0, %v3121_v43  ;;  %v220_v43 = vadd.f32 %v3323_v58, %v3289_v19 }
 0x3b5   :  { %3122 = vrcp.f32 %v446_v44 }
 0x3bf   :  { %v3123_v45 = vpop.eup %3122 }
 0x3c0   :  { %v460_v53 = vsub.f32 1.0, %v3123_v45  ;;  %v466_v55 = vmul.f32 %v3123_v45, %v3294_v35 }
 0x416   :  { %v451_v46 = vpop.permute.xlu0 %450 }
 0x417   :  { %v453_v47 = vmul.f32 %v3123_v45, %v451_v46 }
 0x419   :  { %455 = vrot.lane.b32.xlu1 %v453_v47, %s3204_s7 }
 0x48b   :  { %v456_v48 = vpop.permute.xlu1 %455 }
 0x48c   :  { %v458_v49 = vadd.f32 %v456_v48, %v210_v40 }
 0x48e   :  { %3124 = vtanh.f32 %v458_v49 }
 0x498   :  { %v3125_v52 = vpop.eup %3124 }
 0x499   :  { %462 = vrot.lane.b32.xlu0 %v3125_v52, %s3205_s10 }
 0x50b   :  { %v463_v54 = vpop.permute.xlu0 %462 }
 0x50c   :  { %v465_v56 = vmul.f32 %v463_v54, %v460_v53 }
 0x50e   :  { %v3319_v57 = vadd.f32 %v466_v55, %v465_v56 }
 0x510   :  { %469 = vrot.lane.b32.xlu1 %v3319_v57, %s3205_s10 }
 0x582   :  { %v470_v60 = vpop.permute.xlu1 %469 }
 0x583   :  { %2780 = vmatmul.mubr.msk.f32.vlgmr.msra.gmra.mrb[4].mxu1 %vm267_vm2, %v470_v60 }
 0x584   :  { %3023 = vmatpush3.bf16.msra.mxu1 %v3240_v4  ;;  %2801 = vmatprep.mubr.msk.f32.mxu1 %vm3202_vm1, %v3203_v10 }
 0x585   :  { %3024 = vmatprep.subr.bf16.mxu1 %v3201_v3 }
 0x588   :  { %3026 = vmatpush3.bf16.msra.mxu1 %v3257_v11 }
 0x589   :  { %3033 = vmatprep.subr.bf16.mxu1 %v3201_v3 }
 0x656   :  { %v539_v61 = vpop.f32.mrb[4].mxu1 }
 0x657   :  { %v540_v62 = vadd.f32 %v3282_v14, %v539_v61  ;;  %v2781_v63 = vpop.f32.mrb[5].mxu1 }
 0x659   :  { %551 = vrot.lane.b32.xlu0 %v540_v62, %s3204_s7  ;;  %v543_v1 = vadd.f32 %v540_v62, %v215_v0 }
 0x65b   :  { %v2501_v2 = vmul.f32 -1.442695, %v543_v1 }
 0x65d   :  { %3126 = vpow2.f32 %v2501_v2 }
 0x667   :  { %v3127_v5 = vpop.eup %3126 }
 0x668   :  { %v547_v6 = vadd.f32 1.0, %v3127_v5 }
 0x66a   :  { %3128 = vrcp.f32 %v547_v6 }
 0x674   :  { %v3129_v7 = vpop.eup %3128 }
 0x675   :  { %v561_v25 = vsub.f32 1.0, %v3129_v7  ;;  %v567_v27 = vmul.f32 %v3129_v7, %v3319_v57 }
 0x6cb   :  { %v552_v8 = vpop.permute.xlu0 %551 }
 0x6cc   :  { %v554_v9 = vmul.f32 %v3129_v7, %v552_v8 }
 0x6ce   :  { %556 = vrot.lane.b32.xlu1 %v554_v9, %s3204_s7 }
 0x740   :  { %v557_v12 = vpop.permute.xlu1 %556 }
 0x741   :  { %v559_v13 = vadd.f32 %v557_v12, %v215_v0  ;;  %v225_v0 = vadd.f32 %v3289_v19, %v224_v31 }
 0x743   :  { %3130 = vtanh.f32 %v559_v13 }
 0x74d   :  { %v3131_v22 = vpop.eup %3130 }
 0x74e   :  { %563 = vrot.lane.b32.xlu0 %v3131_v22, %s3205_s10 }
 0x7c0   :  { %v564_v26 = vpop.permute.xlu0 %563 }
 0x7c1   :  { %v566_v28 = vmul.f32 %v564_v26, %v561_v25  ;;  %v230_v26 = vadd.f32 %v3376_v30, %v3289_v19 }
 0x7c3   :  { %v3372_v29 = vadd.f32 %v567_v27, %v566_v28 }
 0x7c5   :  { %570 = vrot.lane.b32.xlu1 %v3372_v29, %s3205_s10 }
 0x837   :  { %v571_v39 = vpop.permute.xlu1 %570 }
 0x838   :  { %2791 = vmatmul.mubr.msk.f32.vlgmr.msra.gmra.mrb[12].mxu0 %vm267_vm2, %v571_v39 }
 0x839   :  { %3029 = vmatpush3.bf16.msra.mxu0 %v3240_v4  ;;  %2812 = vmatprep.mubr.msk.f32.mxu0 %vm3202_vm1, %v3203_v10 }
 0x83a   :  { %3030 = vmatprep.subr.bf16.mxu0 %v3201_v3 }
 0x83d   :  { %3032 = vmatpush3.bf16.msra.mxu0 %v3257_v11 }
 0x83e   :  { %3039 = vmatprep.subr.bf16.mxu0 %v3201_v3 }
 0x90b   :  { %v640_v40 = vpop.f32.mrb[12].mxu0 }
 0x90c   :  { %v641_v41 = vadd.f32 %v3282_v14, %v640_v40  ;;  %v2792_v42 = vpop.f32.mrb[13].mxu0 }
 0x90e   :  { %652 = vrot.lane.b32.xlu0 %v641_v41, %s3204_s7  ;;  %v644_v44 = vadd.f32 %v641_v41, %v220_v43 }
 0x910   :  { %v2503_v45 = vmul.f32 -1.442695, %v644_v44 }
 0x912   :  { %3132 = vpow2.f32 %v2503_v45 }
 0x91c   :  { %v3133_v46 = vpop.eup %3132 }
 0x91d   :  { %v648_v47 = vadd.f32 1.0, %v3133_v46 }
 0x91f   :  { %3134 = vrcp.f32 %v648_v47 }
 0x929   :  { %v3135_v48 = vpop.eup %3134 }
 0x92a   :  { %v662_v54 = vsub.f32 1.0, %v3135_v48  ;;  %v668_v56 = vmul.f32 %v3135_v48, %v3372_v29 }
 0x980   :  { %v653_v49 = vpop.permute.xlu0 %652 }
 0x981   :  { %v655_v50 = vmul.f32 %v3135_v48, %v653_v49 }
 0x983   :  { %657 = vrot.lane.b32.xlu1 %v655_v50, %s3204_s7 }
 0x9f5   :  { %v658_v51 = vpop.permute.xlu1 %657 }
 0x9f6   :  { %v660_v52 = vadd.f32 %v658_v51, %v220_v43 }
 0x9f8   :  { %3136 = vtanh.f32 %v660_v52 }
 0xa02   :  { %v3137_v53 = vpop.eup %3136 }
 0xa03   :  { %664 = vrot.lane.b32.xlu0 %v3137_v53, %s3205_s10 }
 0xa75   :  { %v665_v55 = vpop.permute.xlu0 %664 }
 0xa76   :  { %v667_v58 = vmul.f32 %v665_v55, %v662_v54  ;;  %v235_v54 = vadd.f32 %v3289_v19, %v3380_v33 }
 0xa78   :  { %v3404_v59 = vadd.f32 %v668_v56, %v667_v58 }
 0xa7a   :  { %671 = vrot.lane.b32.xlu1 %v3404_v59, %s3205_s10 }
 0xaec   :  { %v672_v60 = vpop.permute.xlu1 %671 }
 0xaed   :  { %2802 = vmatmul.mubr.msk.f32.vlgmr.msra.gmra.mrb[6].mxu1 %vm267_vm2, %v672_v60 }
 0xaee   :  { %3035 = vmatpush3.bf16.msra.mxu1 %v3240_v4  ;;  %2823 = vmatprep.mubr.msk.f32.mxu1 %vm3202_vm1, %v3203_v10 }
 0xaef   :  { %3036 = vmatprep.subr.bf16.mxu1 %v3201_v3 }
 0xaf2   :  { %3038 = vmatpush3.bf16.msra.mxu1 %v3257_v11 }
 0xaf3   :  { %3045 = vmatprep.subr.bf16.mxu1 %v3201_v3 }
 0xbc0   :  { %v741_v61 = vpop.f32.mrb[6].mxu1 }
 0xbc1   :  { %v742_v62 = vadd.f32 %v3282_v14, %v741_v61  ;;  %v2803_v63 = vpop.f32.mrb[7].mxu1 }
 0xbc3   :  { %753 = vrot.lane.b32.xlu0 %v742_v62, %s3204_s7  ;;  %v745_v1 = vadd.f32 %v742_v62, %v225_v0 }
 0xbc5   :  { %v2505_v2 = vmul.f32 -1.442695, %v745_v1 }
 0xbc7   :  { %3138 = vpow2.f32 %v2505_v2 }
 0xbd1   :  { %v3139_v5 = vpop.eup %3138 }
 0xbd2   :  { %v749_v6 = vadd.f32 1.0, %v3139_v5 }
 0xbd4   :  { %3140 = vrcp.f32 %v749_v6 }
 0xbde   :  { %v3141_v7 = vpop.eup %3140 }
 0xbdf   :  { %v763_v16 = vsub.f32 1.0, %v3141_v7  ;;  %v769_v18 = vmul.f32 %v3141_v7, %v3404_v59 }
 0xc35   :  { %v754_v8 = vpop.permute.xlu0 %753 }
 0xc36   :  { %v756_v9 = vmul.f32 %v3141_v7, %v754_v8 }
 0xc38   :  { %758 = vrot.lane.b32.xlu1 %v756_v9, %s3204_s7 }
 0xcaa   :  { %v759_v12 = vpop.permute.xlu1 %758 }
 0xcab   :  { %v761_v13 = vadd.f32 %v759_v12, %v225_v0 }
 0xcad   :  { %3142 = vtanh.f32 %v761_v13 }
 0xcb7   :  { %v3143_v15 = vpop.eup %3142 }
 0xcb8   :  { %765 = vrot.lane.b32.xlu0 %v3143_v15, %s3205_s10 }
 0xd2a   :  { %v766_v17 = vpop.permute.xlu0 %765 }
 0xd2b   :  { %v768_v20 = vmul.f32 %v766_v17, %v763_v16  ;;  %v240_v16 = vadd.f32 %v3378_v32, %v3289_v19 }
 0xd2d   :  { %v3421_v21 = vadd.f32 %v769_v18, %v768_v20 }
 0xd2f   :  { %772 = vrot.lane.b32.xlu1 %v3421_v21, %s3205_s10 }
 0xda1   :  { %v773_v22 = vpop.permute.xlu1 %772 }
 0xda2   :  { %2813 = vmatmul.mubr.msk.f32.vlgmr.msra.gmra.mrb[14].mxu0 %vm267_vm2, %v773_v22 }
 0xda3   :  { %3041 = vmatpush3.bf16.msra.mxu0 %v3240_v4  ;;  %2834 = vmatprep.mubr.msk.f32.mxu0 %vm3202_vm1, %v3203_v10 }
 0xda4   :  { %3042 = vmatprep.subr.bf16.mxu0 %v3201_v3 }
 0xda7   :  { %3044 = vmatpush3.bf16.msra.mxu0 %v3257_v11 }
 0xda8   :  { %3051 = vmatprep.subr.bf16.mxu0 %v3201_v3 }
 0xe75   :  { %v842_v23 = vpop.f32.mrb[14].mxu0 }
 0xe76   :  { %v843_v24 = vadd.f32 %v3282_v14, %v842_v23  ;;  %v2814_v25 = vpop.f32.mrb[15].mxu0 }
 0xe78   :  { %854 = vrot.lane.b32.xlu0 %v843_v24, %s3204_s7  ;;  %v846_v27 = vadd.f32 %v843_v24, %v230_v26 }
 0xe7a   :  { %v2507_v28 = vmul.f32 -1.442695, %v846_v27 }
 0xe7c   :  { %3144 = vpow2.f32 %v2507_v28 }
 0xe86   :  { %v3145_v31 = vpop.eup %3144 }
 0xe87   :  { %v850_v39 = vadd.f32 1.0, %v3145_v31 }
 0xe89   :  { %3146 = vrcp.f32 %v850_v39 }
 0xe93   :  { %v3147_v40 = vpop.eup %3146 }
 0xe94   :  { %v864_v46 = vsub.f32 1.0, %v3147_v40  ;;  %v870_v30 = vmul.f32 %v3147_v40, %v3421_v21 }
 0xeea   :  { %v855_v41 = vpop.permute.xlu0 %854 }
 0xeeb   :  { %v857_v42 = vmul.f32 %v3147_v40, %v855_v41 }
 0xeed   :  { %859 = vrot.lane.b32.xlu1 %v857_v42, %s3204_s7 }
 0xf5f   :  { %v860_v43 = vpop.permute.xlu1 %859 }
 0xf60   :  { %v862_v44 = vadd.f32 %v860_v43, %v230_v26 }
 0xf62   :  { %3148 = vtanh.f32 %v862_v44 }
 0xf6c   :  { %v3149_v45 = vpop.eup %3148 }
 0xf6d   :  { %866 = vrot.lane.b32.xlu0 %v3149_v45, %s3205_s10 }
 0xfdf   :  { %v867_v47 = vpop.permute.xlu0 %866 }
 0xfe0   :  { %v869_v48 = vmul.f32 %v867_v47, %v864_v46  ;;  %v245_v46 = vadd.f32 %v3289_v19, %v3384_v36 }
 0xfe2   :  { %v3439_v49 = vadd.f32 %v870_v30, %v869_v48 }
 0xfe4   :  { %873 = vrot.lane.b32.xlu1 %v3439_v49, %s3205_s10 }
0x1056   :  { %v874_v50 = vpop.permute.xlu1 %873 }
0x1057   :  { %2824 = vmatmul.mubr.msk.f32.vlgmr.msra.gmra.mrb[8].mxu1 %vm267_vm2, %v874_v50 }
0x1058   :  { %3047 = vmatpush3.bf16.msra.mxu1 %v3240_v4  ;;  %2845 = vmatprep.mubr.msk.f32.mxu1 %vm3202_vm1, %v3203_v10 }
0x1059   :  { %3048 = vmatprep.subr.bf16.mxu1 %v3201_v3 }
0x105c   :  { %3050 = vmatpush3.bf16.msra.mxu1 %v3257_v11 }
0x105d   :  { %3057 = vmatprep.subr.bf16.mxu1 %v3201_v3 }
0x112a   :  { %v943_v51 = vpop.f32.mrb[8].mxu1 }
0x112b   :  { %v944_v52 = vadd.f32 %v3282_v14, %v943_v51  ;;  %v2825_v53 = vpop.f32.mrb[9].mxu1 }
0x112d   :  { %955 = vrot.lane.b32.xlu0 %v944_v52, %s3204_s7  ;;  %v947_v55 = vadd.f32 %v944_v52, %v235_v54 }
0x112f   :  { %v2509_v56 = vmul.f32 -1.442695, %v947_v55 }
0x1131   :  { %3150 = vpow2.f32 %v2509_v56 }
0x113b   :  { %v3151_v58 = vpop.eup %3150 }
0x113c   :  { %v951_v60 = vadd.f32 1.0, %v3151_v58 }
0x113e   :  { %3152 = vrcp.f32 %v951_v60 }
0x1148   :  { %v3153_v61 = vpop.eup %3152 }
0x1149   :  { %v965_v5 = vsub.f32 1.0, %v3153_v61  ;;  %v971_v33 = vmul.f32 %v3153_v61, %v3439_v49 }
0x119f   :  { %v956_v62 = vpop.permute.xlu0 %955 }
0x11a0   :  { %v958_v63 = vmul.f32 %v3153_v61, %v956_v62 }
0x11a2   :  { %960 = vrot.lane.b32.xlu1 %v958_v63, %s3204_s7 }
0x1214   :  { %v961_v0 = vpop.permute.xlu1 %960 }
0x1215   :  { %v963_v1 = vadd.f32 %v961_v0, %v235_v54 }
0x1217   :  { %3154 = vtanh.f32 %v963_v1 }
0x1221   :  { %v3155_v2 = vpop.eup %3154 }
0x1222   :  { %967 = vrot.lane.b32.xlu0 %v3155_v2, %s3205_s10 }
0x1294   :  { %v968_v6 = vpop.permute.xlu0 %967 }
0x1295   :  { %v970_v7 = vmul.f32 %v968_v6, %v965_v5  ;;  %v250_v5 = vadd.f32 %v3382_v34, %v3289_v19 }
0x1297   :  { %v3457_v8 = vadd.f32 %v971_v33, %v970_v7 }
0x1299   :  { %974 = vrot.lane.b32.xlu1 %v3457_v8, %s3205_s10 }
0x130b   :  { %v975_v9 = vpop.permute.xlu1 %974 }
0x130c   :  { %2835 = vmatmul.mubr.msk.f32.vlgmr.msra.gmra.mrb[16].mxu0 %vm267_vm2, %v975_v9 }
0x130d   :  { %3053 = vmatpush3.bf16.msra.mxu0 %v3240_v4  ;;  %2856 = vmatprep.mubr.msk.f32.mxu0 %vm3202_vm1, %v3203_v10 }
0x130e   :  { %3054 = vmatprep.subr.bf16.mxu0 %v3201_v3 }
0x1311   :  { %3056 = vmatpush3.bf16.msra.mxu0 %v3257_v11 }
0x1312   :  { %3063 = vmatprep.subr.bf16.mxu0 %v3201_v3 }
0x13df   :  { %v1044_v12 = vpop.f32.mrb[16].mxu0 }
0x13e0   :  { %v1045_v13 = vadd.f32 %v3282_v14, %v1044_v12  ;;  %v2836_v15 = vpop.f32.mrb[17].mxu0 }
0x13e2   :  { %1056 = vrot.lane.b32.xlu0 %v1045_v13, %s3204_s7  ;;  %v1048_v17 = vadd.f32 %v1045_v13, %v240_v16 }
0x13e4   :  { %v2511_v18 = vmul.f32 -1.442695, %v1048_v17 }
0x13e6   :  { %3156 = vpow2.f32 %v2511_v18 }
0x13f0   :  { %v3157_v20 = vpop.eup %3156 }
0x13f1   :  { %v1052_v22 = vadd.f32 1.0, %v3157_v20 }
0x13f3   :  { %3158 = vrcp.f32 %v1052_v22 }
0x13fd   :  { %v3159_v23 = vpop.eup %3158 }
0x13fe   :  { %v1066_v31 = vsub.f32 1.0, %v3159_v23  ;;  %v1072_v32 = vmul.f32 %v3159_v23, %v3457_v8 }
0x1454   :  { %v1057_v24 = vpop.permute.xlu0 %1056 }
0x1455   :  { %v1059_v25 = vmul.f32 %v3159_v23, %v1057_v24 }
0x1457   :  { %1061 = vrot.lane.b32.xlu1 %v1059_v25, %s3204_s7  ;;  %v255_v25 = vadd.f32 %v3289_v19, %v3388_v38  ;;  %v46_v38 = vld [vmem:[%s3913_s0 + $0x98] sm:$0xf] }
0x14c9   :  { %v1062_v26 = vpop.permute.xlu1 %1061 }
0x14ca   :  { %v1064_v27 = vadd.f32 %v1062_v26, %v240_v16 }
0x14cc   :  { %3160 = vtanh.f32 %v1064_v27 }
0x14d6   :  { %v3161_v28 = vpop.eup %3160 }
0x14d7   :  { %1068 = vrot.lane.b32.xlu0 %v3161_v28, %s3205_s10 }
0x1549   :  { %v1069_v39 = vpop.permute.xlu0 %1068 }
0x154a   :  { %v1071_v40 = vmul.f32 %v1069_v39, %v1066_v31 }
0x154c   :  { %v3475_v41 = vadd.f32 %v1072_v32, %v1071_v40 }
0x154e   :  { %1075 = vrot.lane.b32.xlu1 %v3475_v41, %s3205_s10 }
0x15c0   :  { %v1076_v42 = vpop.permute.xlu1 %1075 }
0x15c1   :  { %2846 = vmatmul.mubr.msk.f32.vlgmr.msra.gmra.mrb[10].mxu1 %vm267_vm2, %v1076_v42 }
0x15c2   :  { %3059 = vmatpush3.bf16.msra.mxu1 %v3240_v4  ;;  %2867 = vmatprep.mubr.msk.f32.mxu1 %vm3202_vm1, %v3203_v10 }
0x15c3   :  { %3060 = vmatprep.subr.bf16.mxu1 %v3201_v3 }
0x15c6   :  { %3062 = vmatpush3.bf16.msra.mxu1 %v3257_v11 }
0x15c7   :  { %3093 = vmatprep.subr.msk.mxu1 %vm1507_vm3, %v46_v38 }
0x1694   :  { %v1145_v43 = vpop.f32.mrb[10].mxu1 }
0x1695   :  { %v1146_v44 = vadd.f32 %v3282_v14, %v1145_v43  ;;  %v2847_v45 = vpop.f32.mrb[11].mxu1 }
0x1697   :  { %1157 = vrot.lane.b32.xlu0 %v1146_v44, %s3204_s7  ;;  %v1149_v47 = vadd.f32 %v1146_v44, %v245_v46 }
0x1699   :  { %v2513_v30 = vmul.f32 -1.442695, %v1149_v47  ;;  %v69_v47 = vld [vmem:[%s3914_s1 + $0x80] sm:$0xff] }
0x169b   :  { %3162 = vpow2.f32 %v2513_v30  ;;  %v70_v30 = vld [vmem:[%s3914_s1 + $0x88] sm:$0xff] }
0x16a5   :  { %v3163_v48 = vpop.eup %3162 }
0x16a6   :  { %v1153_v50 = vadd.f32 1.0, %v3163_v48  ;;  %v71_v48 = vld [vmem:[%s3914_s1 + $0x90] sm:$0xff] }
0x16a8   :  { %3164 = vrcp.f32 %v1153_v50 }
0x16b2   :  { %v3165_v51 = vpop.eup %3164 }
0x16b3   :  { %v1167_v58 = vsub.f32 1.0, %v3165_v51  ;;  %v1173_v36 = vmul.f32 %v3165_v51, %v3475_v41 }
0x1709   :  { %v1158_v52 = vpop.permute.xlu0 %1157 }
0x170a   :  { %v1160_v53 = vmul.f32 %v3165_v51, %v1158_v52 }
0x170c   :  { %1162 = vrot.lane.b32.xlu1 %v1160_v53, %s3204_s7  ;;  %v72_v53 = vld [vmem:[%s3914_s1 + $0x98] sm:$0xff] }
0x177e   :  { %v1163_v54 = vpop.permute.xlu1 %1162 }
0x177f   :  { %v1165_v55 = vadd.f32 %v1163_v54, %v245_v46  ;;  %v65_v54 = vld [vmem:[%s3914_s1 + $0x60] sm:$0xff] }
0x1781   :  { %3166 = vtanh.f32 %v1165_v55 }
0x178b   :  { %v3167_v56 = vpop.eup %3166 }
0x178c   :  { %1169 = vrot.lane.b32.xlu0 %v3167_v56, %s3205_s10  ;;  %v66_v56 = vld [vmem:[%s3914_s1 + $0x68] sm:$0xff] }
0x17fe   :  { %v1170_v60 = vpop.permute.xlu0 %1169 }
0x17ff   :  { %v1172_v61 = vmul.f32 %v1170_v60, %v1167_v58  ;;  %v67_v58 = vld [vmem:[%s3914_s1 + $0x70] sm:$0xff]  ;;  %v68_v60 = vld [vmem:[%s3914_s1 + $0x78] sm:$0xff] }
0x1801   :  { %v1174_v62 = vadd.f32 %v1173_v36, %v1172_v61 }
0x1803   :  { %1176 = vrot.lane.b32.xlu1 %v1174_v62, %s3205_s10 }
0x1875   :  { %v3493_v63 = vpop.permute.xlu1 %1176 }
0x1876   :  { %2857 = vmatmul.mubr.msk.f32.vlgmr.msra.gmra.mrb[18].mxu0 %vm267_vm2, %v3493_v63 }
0x1877   :  { %3065 = vmatpush3.bf16.msra.mxu0 %v3240_v4  ;;  %2878 = vmatprep.mubr.msk.f32.mxu0 %vm3202_vm1, %v3203_v10 }
0x1878   :  { %3066 = vmatprep.subr.bf16.mxu0 %v3201_v3 }
0x187b   :  { %3068 = vmatpush3.bf16.msra.mxu0 %v3257_v11 }
0x187c   :  { %2881 = vmatprep.subr.msk.mxu0 %vm1507_vm3, %v46_v38 }
0x1949   :  { %v1246_v0 = vpop.f32.mrb[18].mxu0 }
0x194a   :  { %v1247_v1 = vadd.f32 %v3282_v14, %v1246_v0  ;;  %v2858_v2 = vpop.f32.mrb[19].mxu0 }
0x194c   :  { %1258 = vrot.lane.b32.xlu0 %v1247_v1, %s3204_s7  ;;  %v1250_v6 = vadd.f32 %v1247_v1, %v250_v5 }
0x194e   :  { %v2515_v33 = vmul.f32 -1.442695, %v1250_v6  ;;  %v2520_v6 = vld [vmem:[%s3913_s0 + $0xa2] ss:$0 sm:$0xff] }
0x1950   :  { %3168 = vpow2.f32 %v2515_v33 }
0x195a   :  { %v3169_v4 = vpop.eup %3168 }
0x195b   :  { %v1254_v7 = vadd.f32 1.0, %v3169_v4  ;;  %v1627_v4 = vstv %s2530_s22 }
0x195d   :  { %3170 = vrcp.f32 %v1254_v7 }
0x1967   :  { %v3171_v10 = vpop.eup %3170 }
0x1968   :  { %v1268_v15 = vsub.f32 1.0, %v3171_v10  ;;  %v1274_v34 = vmul.f32 %v3171_v10, %v1174_v62 }
0x19be   :  { %v1259_v9 = vpop.permute.xlu0 %1258 }
0x19bf   :  { %v1261_v3 = vmul.f32 %v3171_v10, %v1259_v9 }
0x19c1   :  { %1263 = vrot.lane.b32.xlu1 %v1261_v3, %s3204_s7 }
0x1a33   :  { %v1264_v11 = vpop.permute.xlu1 %1263 }
0x1a34   :  { %v1266_v12 = vadd.f32 %v1264_v11, %v250_v5 }
0x1a36   :  { %3172 = vtanh.f32 %v1266_v12 }
0x1a40   :  { %v3173_v13 = vpop.eup %3172 }
0x1a41   :  { %1270 = vrot.lane.b32.xlu0 %v3173_v13, %s3205_s10 }
0x1ab3   :  { %v1271_v16 = vpop.permute.xlu0 %1270 }
0x1ab4   :  { %v1273_v17 = vmul.f32 %v1271_v16, %v1268_v15 }
0x1ab6   :  { %v1275_v18 = vadd.f32 %v1274_v34, %v1273_v17  ;;  %v260_v17 = vadd.f32 %v3386_v37, %v3289_v19 }
0x1ab8   :  { %1277 = vrot.lane.b32.xlu1 %v1275_v18, %s3205_s10 }
0x1b2a   :  { %v3509_v20 = vpop.permute.xlu1 %1277 }
0x1b2b   :  { %2868 = vmatmul.mubr.msk.f32.vlgmr.msra.gmra.mrb[12].mxu1 %vm267_vm2, %v3509_v20 }
0x1b2c   :  { %3094 = vmatpush3.msk.msra.mxu1 %vm1507_vm3, %v46_v38  ;;  %2889 = vmatprep.mubr.msk.f32.mxu1 %vm1482_vm4, %v69_v47  ;;  %v33_v47 = vld [vmem:[%s3913_s0 + $0x30] sm:$0xff] }
0x1b2f   :  { %2890 = vmatmul.mubr.msk.f32.vlgmr.msra.gmra.mrb[14].mxu1 %vm1482_vm4, %v70_v30  ;;  %v34_v30 = vld [vmem:[%s3913_s0 + $0x38] sm:$0xff] }
0x1b30   :  { %2892 = vmatprep.mubr.msk.f32.mxu1 %vm1482_vm4, %v71_v48  ;;  %v3069_v48 = vpack.c.bf16 %v34_v30, %v33_v47 }
0x1b33   :  { %2893 = vmatmul.mubr.msk.f32.gmra.mrb[16].mxu1 %vm1482_vm4, %v72_v53 }
0x1bfe   :  { %v1347_v22 = vpop.f32.mrb[12].mxu1 }
0x1bff   :  { %v1348_v23 = vadd.f32 %v3282_v14, %v1347_v22  ;;  %v2869_v24 = vpop.f32.mrb[13].mxu1 }
0x1c01   :  { %1359 = vrot.lane.b32.xlu0 %v1348_v23, %s3204_s7  ;;  %v1351_v26 = vadd.f32 %v1348_v23, %v255_v25 }
0x1c02   :  { %v2891_v36 = vpop.f32.mrb[14].mxu1 }
0x1c03   :  { %v2517_v27 = vmul.f32 -1.442695, %v1351_v26  ;;  %v1597_v61 = vpop.f32.mrb[15].mxu1 }
0x1c04   :  { %v1598_v13 = vadd.f32 %v2520_v6, %v1597_v61 }
0x1c05   :  { %3174 = vpow2.f32 %v2517_v27 }
0x1c06   :  { %v2894_v62 = vpop.f32.mrb[16].mxu1  ;;  %v1632_v15 = vmul.f32 %v1627_v4, %v1598_v13 }
0x1c07   :  { %v1607_v0 = vpop.f32.mrb[17].mxu1  ;;  %v1613_v37 = vadd.f32 %v2894_v62, %v2520_v6 }
0x1c08   :  { %v1608_v16 = vadd.f32 %v2520_v6, %v1607_v0 }
0x1c0a   :  { %v1634_v34 = vmul.f32 %v1627_v4, %v1608_v16 }
0x1c0f   :  { %v3175_v28 = vpop.eup %3174 }
0x1c10   :  { %v1355_v31 = vadd.f32 1.0, %v3175_v28 }
0x1c12   :  { %3176 = vrcp.f32 %v1355_v31 }
0x1c1c   :  { %v3177_v39 = vpop.eup %3176 }
0x1c1d   :  { %v1369_v45 = vsub.f32 1.0, %v3177_v39  ;;  %v1375_v50 = vmul.f32 %v3177_v39, %v1275_v18 }
0x1c73   :  { %v1360_v32 = vpop.permute.xlu0 %1359 }
0x1c74   :  { %v1362_v40 = vmul.f32 %v3177_v39, %v1360_v32 }
0x1c76   :  { %1364 = vrot.lane.b32.xlu1 %v1362_v40, %s3204_s7  ;;  %v1603_v40 = vadd.f32 %v2891_v36, %v2520_v6  ;;  %v36_v36 = vld [vmem:[%s3913_s0 + $0x48] sm:$0xff] }
0x1c78   :  { %v1633_v19 = vmul.f32 %v1627_v4, %v1603_v40 }
0x1ce8   :  { %v1365_v42 = vpop.permute.xlu1 %1364 }
0x1ce9   :  { %v1367_v43 = vadd.f32 %v1365_v42, %v255_v25 }
0x1ceb   :  { %3178 = vtanh.f32 %v1367_v43  ;;  %v1635_v43 = vmul.f32 %v1627_v4, %v1613_v37 }
0x1cf5   :  { %v3179_v44 = vpop.eup %3178 }
0x1cf6   :  { %1371 = vrot.lane.b32.xlu0 %v3179_v44, %s3205_s10  ;;  %v1617_v44 = vstv %s1616_s26 }
0x1d68   :  { %v1372_v46 = vpop.permute.xlu0 %1371 }
0x1d69   :  { %v1374_v51 = vmul.f32 %v1372_v46, %v1369_v45  ;;  %v1618_v45 = vmul.f32 %v1617_v44, %v3294_v35  ;;  %v1622_v35 = vmul.f32 %v1617_v44, %v3421_v21 }
0x1d6b   :  { %v3536_v52 = vadd.f32 %v1375_v50, %v1374_v51  ;;  %v1620_v50 = vmul.f32 %v1617_v44, %v3372_v29  ;;  %v35_v29 = vld [vmem:[%s3913_s0 + $0x40] sm:$0xff] }
0x1d6c   :  { %v3073_v21 = vpack.c.bf16 %v36_v36, %v35_v29 }
0x1d6d   :  { %1378 = vrot.lane.b32.xlu1 %v3536_v52, %s3205_s10 }
0x1ddf   :  { %v3548_v55 = vpop.permute.xlu1 %1378 }
0x1de0   :  { %2879 = vmatmul.mubr.msk.f32.vlgmr.msra.gmra.mrb[20].mxu0 %vm267_vm2, %v3548_v55 }
0x1de1   :  { %2882 = vmatpush3.msk.msra.mxu0 %vm1507_vm3, %v46_v38  ;;  %2883 = vmatprep.mubr.msk.f32.mxu0 %vm1482_vm4, %v65_v54 }
0x1de2   :  { %3070 = vmatprep.subr.bf16.mxu0 %v3069_v48 }
0x1de4   :  { %2884 = vmatmul.mubr.msk.f32.vlgmr.msra.gmra.mrb[22].mxu0 %vm1482_vm4, %v66_v56 }
0x1de5   :  { %2886 = vmatprep.mubr.msk.f32.mxu0 %vm1482_vm4, %v67_v58  ;;  %3072 = vmatpush3.bf16.msra.mxu0 %v3069_v48  ;;  %v1624_v58 = vmul.f32 %v1617_v44, %v3457_v8 }
0x1de6   :  { %3074 = vmatprep.subr.bf16.mxu0 %v3073_v21 }
0x1de8   :  { %2887 = vmatmul.mubr.msk.f32.gmra.mrb[24].mxu0 %vm1482_vm4, %v68_v60 }
0x1de9   :  { %3076 = vmatpush3.bf16.msra.mxu0 %v3073_v21 }
0x1eb3   :  { %v1448_v1 = vpop.f32.mrb[20].mxu0 }
0x1eb4   :  { %v1449_v2 = vadd.f32 %v3282_v14, %v1448_v1  ;;  %v2880_v5 = vpop.f32.mrb[21].mxu0 }
0x1eb5   :  { %v1619_v5 = vmul.f32 %v1617_v44, %v3319_v57 }
0x1eb6   :  { %1460 = vrot.lane.b32.xlu0 %v1449_v2, %s3204_s7  ;;  %v1452_v18 = vadd.f32 %v1449_v2, %v260_v17 }
0x1eb7   :  { %v2885_v33 = vpop.f32.mrb[22].mxu0 }
0x1eb8   :  { %v1577_v7 = vpop.f32.mrb[23].mxu0  ;;  %v2519_v22 = vmul.f32 -1.442695, %v1452_v18  ;;  %v1583_v25 = vadd.f32 %v2885_v33, %v2520_v6 }
0x1eb9   :  { %v1578_v10 = vadd.f32 %v2520_v6, %v1577_v7 }
0x1eba   :  { %3180 = vpow2.f32 %v2519_v22  ;;  %v1629_v31 = vmul.f32 %v1627_v4, %v1583_v25  ;;  %v40_v25 = vld [vmem:[%s3913_s0 + $0x68] sm:$0xff] }
0x1ebb   :  { %v1628_v9 = vmul.f32 %v1627_v4, %v1578_v10  ;;  %v2888_v3 = vpop.f32.mrb[24].mxu0 }
0x1ebc   :  { %v1587_v11 = vpop.f32.mrb[25].mxu0  ;;  %v1593_v39 = vadd.f32 %v2888_v3, %v2520_v6 }
0x1ebd   :  { %v1588_v12 = vadd.f32 %v2520_v6, %v1587_v11  ;;  %1644 = vrot.lane.b32.xlu0 %v1628_v9, %s3206_s25  ;;  %v1623_v9 = vmul.f32 %v1617_v44, %v3439_v49  ;;  %v1625_v11 = vmul.f32 %v1617_v44, %v3475_v41 }
0x1ebe   :  { %v1631_v32 = vmul.f32 %v1627_v4, %v1593_v39 }
0x1ebf   :  { %v1630_v14 = vmul.f32 %v1627_v4, %v1588_v12  ;;  %v1621_v4 = vmul.f32 %v1617_v44, %v3404_v59  ;;  %v38_v59 = vld [vmem:[%s3913_s0 + $0x58] sm:$0xff]  ;;  %v39_v12 = vld [vmem:[%s3913_s0 + $0x60] sm:$0xff] }
0x1ec0   :  { %v3077_v13 = vpack.c.bf16 %v39_v12, %v38_v59 }
0x1ec1   :  { %1648 = vrot.lane.b32.xlu0 %v1630_v14, %s3206_s25 }
0x1ec2   :  { %3078 = vmatprep.subr.bf16.mxu1 %v3077_v13 }
0x1ec3   :  { %3080 = vmatpush3.bf16.msra.mxu1 %v3077_v13 }
0x1ec4   :  { %v3181_v23 = vpop.eup %3180 }
0x1ec5   :  { %1652 = vrot.lane.b32.xlu0 %v1632_v15, %s3206_s25  ;;  %v1456_v24 = vadd.f32 1.0, %v3181_v23 }
0x1ec7   :  { %3182 = vrcp.f32 %v1456_v24 }
0x1ec9   :  { %1656 = vrot.lane.b32.xlu0 %v1634_v34, %s3206_s25 }
0x1ed1   :  { %v3577_v26 = vpop.eup %3182 }
0x1ed2   :  { %v1470_v49 = vsub.f32 1.0, %v3577_v26  ;;  %v1476_v15 = vmul.f32 %v3577_v26, %v3536_v52 }
0x1f28   :  { %v1461_v27 = vpop.permute.xlu0 %1460 }
0x1f29   :  { %v1463_v28 = vmul.f32 %v3577_v26, %v1461_v27  ;;  %v41_v26 = vld [vmem:[%s3913_s0 + $0x70] sm:$0xff] }
0x1f2a   :  { %v3081_v27 = vpack.c.bf16 %v41_v26, %v40_v25 }
0x1f2b   :  { %1465 = vrot.lane.b32.xlu1 %v1463_v28, %s3204_s7 }
0x1f2c   :  { %3082 = vmatprep.subr.bf16.mxu1 %v3081_v27 }
0x1f2d   :  { %3084 = vmatpush3.bf16.msra.mxu1 %v3081_v27 }
0x1f2f   :  { %1646 = vrot.lane.b32.xlu1 %v1629_v31, %s3206_s25  ;;  %v1645_v42 = vpop.permute.xlu0 %1644 }
0x1f30   :  { %v1668_v46 = vadd.f32 %v1645_v42, %v1618_v45 }
0x1f33   :  { %1650 = vrot.lane.b32.xlu1 %v1631_v32, %s3206_s25  ;;  %v1649_v38 = vpop.permute.xlu0 %1648 }
0x1f34   :  { %v1670_v53 = vadd.f32 %v1649_v38, %v1620_v50 }
0x1f37   :  { %1654 = vrot.lane.b32.xlu1 %v1633_v19, %s3206_s25  ;;  %v1653_v51 = vpop.permute.xlu0 %1652 }
0x1f38   :  { %v1672_v54 = vadd.f32 %v1653_v51, %v1622_v35  ;;  %v42_v51 = vld [vmem:[%s3913_s0 + $0x78] sm:$0xff]  ;;  %v44_v35 = vld [vmem:[%s3913_s0 + $0x88] sm:$0xff] }
0x1f3b   :  { %1658 = vrot.lane.b32.xlu1 %v1635_v43, %s3206_s25  ;;  %v1657_v56 = vpop.permute.xlu0 %1656 }
0x1f3c   :  { %v1674_v60 = vadd.f32 %v1657_v56, %v1624_v58  ;;  %v45_v58 = vld [vmem:[%s3913_s0 + $0x90] sm:$0xff] }
0x1f3d   :  { %v3089_v29 = vpack.c.bf16 %v45_v58, %v44_v35 }
0x1f3f   :  { %1689 = vrot.lane.b32.xlu1 %v1668_v46, %s3205_s10 }
0x1f43   :  { %1693 = vrot.lane.b32.xlu1 %v1670_v53, %s3205_s10  ;;  %v43_v53 = vld [vmem:[%s3913_s0 + $0x80] sm:$0xff] }
0x1f44   :  { %v3085_v56 = vpack.c.bf16 %v43_v53, %v42_v51 }
0x1f46   :  { %3086 = vmatprep.subr.bf16.mxu0 %v3085_v56 }
0x1f47   :  { %1697 = vrot.lane.b32.xlu1 %v1672_v54, %s3205_s10 }
0x1f4b   :  { %1701 = vrot.lane.b32.xlu1 %v1674_v60, %s3205_s10 }
0x1f9d   :  { %v1466_v61 = vpop.permute.xlu1 %1465 }
0x1f9e   :  { %v1468_v62 = vadd.f32 %v1466_v61, %v260_v17 }
0x1fa0   :  { %3184 = vtanh.f32 %v1468_v62 }
0x1fa1   :  { %v1647_v8 = vpop.permute.xlu1 %1646 }
0x1fa2   :  { %v1669_v6 = vadd.f32 %v1647_v8, %v1619_v5  ;;  %v76_v5 = vld [vmem:[%s3914_s1 + $0xb8] sm:$0xff] }
0x1fa5   :  { %v1651_v0 = vpop.permute.xlu1 %1650 }
0x1fa6   :  { %v1671_v7 = vadd.f32 %v1651_v0, %v1621_v4  ;;  %v73_v0 = vld [vmem:[%s3914_s1 + $0xa0] sm:$0xff]  ;;  %v79_v4 = vld [vmem:[%s3914_s1 + $0xd0] sm:$0xff] }
0x1fa9   :  { %v1655_v1 = vpop.permute.xlu1 %1654 }
0x1faa   :  { %v3185_v2 = vpop.eup %3184  ;;  %v1673_v3 = vadd.f32 %v1655_v1, %v1623_v9  ;;  %v74_v1 = vld [vmem:[%s3914_s1 + $0xa8] sm:$0xff] }
0x1fab   :  { %1472 = vrot.lane.b32.xlu0 %v3185_v2, %s3205_s10  ;;  %v75_v2 = vld [vmem:[%s3914_s1 + $0xb0] sm:$0xff]  ;;  %v82_v9 = vld [vmem:[%s3914_s1 + $0xe8] sm:$0xff] }
0x1fad   :  { %v1659_v33 = vpop.permute.xlu1 %1658 }
0x1fae   :  { %v1675_v57 = vadd.f32 %v1659_v33, %v1625_v11  ;;  %v78_v33 = vld [vmem:[%s3914_s1 + $0xc8] sm:$0xff]  ;;  %v84_v11 = vld [vmem:[%s3914_s1 + $0xf8] sm:$0xff] }
0x1faf   :  { %1691 = vrot.lane.b32.xlu0 %v1669_v6, %s3205_s10  ;;  %v77_v6 = vld [vmem:[%s3914_s1 + $0xc0] sm:$0xff] }
0x1fb1   :  { %v1690_v10 = vpop.permute.xlu1 %1689 }
0x1fb2   :  { %2903 = vmatprep.mubr.msk.f32.mxu0 %vm267_vm2, %v1690_v10  ;;  %v81_v10 = vld [vmem:[%s3914_s1 + $0xe0] sm:$0xff] }
0x1fb3   :  { %1695 = vrot.lane.b32.xlu0 %v1671_v7, %s3205_s10  ;;  %v80_v7 = vld [vmem:[%s3914_s1 + $0xd8] sm:$0xff] }
0x1fb5   :  { %v1694_v41 = vpop.permute.xlu1 %1693 }
0x1fb7   :  { %1699 = vrot.lane.b32.xlu0 %v1673_v3, %s3205_s10  ;;  %v83_v3 = vld [vmem:[%s3914_s1 + $0xf0] sm:$0xff] }
0x1fb9   :  { %v1698_v18 = vpop.permute.xlu1 %1697 }
0x1fbb   :  { %1703 = vrot.lane.b32.xlu0 %v1675_v57, %s3205_s10  ;;  %v2569_v57 = vld [vmem:[%s3913_s0 + $0xa4] ss:$0 sm:$0xff] }
0x1fbd   :  { %v1702_v24 = vpop.permute.xlu1 %1701 }
0x201d   :  { %v1473_v14 = vpop.permute.xlu0 %1472 }
0x201e   :  { %v1475_v16 = vmul.f32 %v1473_v14, %v1470_v49 }
0x2020   :  { %v1477_v34 = vadd.f32 %v1476_v15, %v1475_v16 }
0x2021   :  { %v1692_v17 = vpop.permute.xlu0 %1691 }
0x2022   :  { %1705 = vrot.lane.b32.xlu1 %v1477_v34, %s3205_s10  ;;  %2904 = vmatmul.mubr.msk.f32.vlgmr.msra.gmra.mrb[26].mxu0 %vm267_vm2, %v1692_v17 }
0x2023   :  { %2906 = vmatprep.mubr.msk.f32.mxu0 %vm267_vm2, %v1694_v41  ;;  %3088 = vmatpush3.bf16.msra.mxu0 %v3085_v56 }
0x2024   :  { %3090 = vmatprep.subr.bf16.mxu0 %v3089_v29 }
0x2025   :  { %v1696_v22 = vpop.permute.xlu0 %1695 }
0x2026   :  { %2907 = vmatmul.mubr.msk.f32.gmra.mrb[28].mxu0 %vm267_vm2, %v1696_v22 }
0x2027   :  { %2909 = vmatprep.mubr.msk.f32.mxu0 %vm267_vm2, %v1698_v18  ;;  %3092 = vmatpush3.bf16.msra.mxu0 %v3089_v29  ;;  %v3779_v29 = vld [vmem:[%s3913_s0 + $0xa5] ss:$0 sm:$0xff] }
0x2029   :  { %v1700_v23 = vpop.permute.xlu0 %1699 }
0x202a   :  { %2910 = vmatmul.mubr.msk.f32.gmra.mrb[30].mxu0 %vm267_vm2, %v1700_v23 }
0x202b   :  { %2912 = vmatprep.mubr.msk.f32.mxu0 %vm267_vm2, %v1702_v24 }
0x202d   :  { %v1704_v52 = vpop.permute.xlu0 %1703 }
0x202e   :  { %2913 = vmatmul.mubr.msk.f32.gmra.mrb[32].mxu0 %vm267_vm2, %v1704_v52 }
0x202f   :  { %2915 = vmatprep.mubr.msk.f32.mxu0 %vm267_vm2, %v3493_v63  ;;  %v37_v63 = vld [vmem:[%s3913_s0 + $0x50] sm:$0xf] }
0x2030   :  { %2947 = vmatprep.subr.msk.mxu1 %vm1507_vm3, %v37_v63 }
0x2032   :  { %2916 = vmatmul.mubr.msk.f32.gmra.mrb[34].mxu0 %vm267_vm2, %v3509_v20 }
0x2033   :  { %2918 = vmatprep.mubr.msk.f32.mxu0 %vm267_vm2, %v3548_v55  ;;  %v2531_v55 = vld [vmem:[%s3913_s0 + $0xa3] ss:$0 sm:$0xff] }
0x2094   :  { %v1706_v20 = vpop.permute.xlu1 %1705 }
0x2095   :  { %2919 = vmatmul.mubr.msk.f32.gmra.mrb[36].mxu0 %vm267_vm2, %v1706_v20 }
0x20f5   :  { %v2905_v28 = vpop.f32.mrb[26].mxu0 }
0x20f6   :  { %v1791_v31 = vpop.f32.mrb[27].mxu0  ;;  %v3654_v32 = vadd.f32 %v2905_v28, %v2531_v55 }
0x20f7   :  { %v3652_v39 = vadd.f32 %v2531_v55, %v1791_v31 }
0x20f9   :  { %v2908_v40 = vpop.f32.mrb[28].mxu0  ;;  %2929 = vmatprep.mubr.msk.f32.mxu1 %vm267_vm2, %v3652_v39 }
0x20fa   :  { %v1801_v19 = vpop.f32.mrb[29].mxu0  ;;  %2930 = vmatmul.mubr.msk.f32.vlgmr.msra.gmra.mrb[18].mxu1 %vm267_vm2, %v3654_v32  ;;  %v3663_v42 = vadd.f32 %v2908_v40, %v2531_v55 }
0x20fb   :  { %v3660_v37 = vadd.f32 %v2531_v55, %v1801_v19  ;;  %2948 = vmatpush3.msk.msra.mxu1 %vm1507_vm3, %v37_v63 }
0x20fd   :  { %v2911_v43 = vpop.f32.mrb[30].mxu0  ;;  %2932 = vmatprep.mubr.msk.f32.mxu1 %vm267_vm2, %v3660_v37 }
0x20fe   :  { %v1811_v44 = vpop.f32.mrb[31].mxu0  ;;  %2933 = vmatmul.mubr.msk.f32.gmra.mrb[20].mxu1 %vm267_vm2, %v3663_v42  ;;  %v3671_v45 = vadd.f32 %v2911_v43, %v2531_v55 }
0x20ff   :  { %v3669_v38 = vadd.f32 %v2531_v55, %v1811_v44 }
0x2101   :  { %v2914_v46 = vpop.f32.mrb[32].mxu0  ;;  %2935 = vmatprep.mubr.msk.f32.mxu1 %vm267_vm2, %v3669_v38 }
0x2102   :  { %v1821_v47 = vpop.f32.mrb[33].mxu0  ;;  %2936 = vmatmul.mubr.msk.f32.gmra.mrb[22].mxu1 %vm267_vm2, %v3671_v45  ;;  %v3679_v48 = vadd.f32 %v2914_v46, %v2531_v55 }
0x2103   :  { %v3677_v30 = vadd.f32 %v2531_v55, %v1821_v47 }
0x2105   :  { %v2917_v50 = vpop.f32.mrb[34].mxu0  ;;  %2938 = vmatprep.mubr.msk.f32.mxu1 %vm267_vm2, %v3677_v30 }
0x2106   :  { %v1831_v54 = vpop.f32.mrb[35].mxu0  ;;  %2939 = vmatmul.mubr.msk.f32.gmra.mrb[24].mxu1 %vm267_vm2, %v3679_v48  ;;  %v3699_v36 = vadd.f32 %v2917_v50, %v2531_v55 }
0x2107   :  { %v3697_v60 = vadd.f32 %v2531_v55, %v1831_v54 }
0x2109   :  { %2941 = vmatprep.mubr.msk.f32.mxu1 %vm267_vm2, %v3697_v60 }
0x210a   :  { %2942 = vmatmul.mubr.msk.f32.gmra.mrb[26].mxu1 %vm267_vm2, %v3699_v36 }
0x2168   :  { %v2920_v21 = vpop.f32.mrb[36].mxu0 }
0x2169   :  { %v1841_v61 = vpop.f32.mrb[37].mxu0  ;;  %v3707_v8 = vadd.f32 %v2920_v21, %v2531_v55  ;;  %v86_v21 = vld [vmem:[%s3914_s1 + $0x108] sm:$0xff] }
0x216a   :  { %v3705_v62 = vadd.f32 %v2531_v55, %v1841_v61 }
0x216c   :  { %2944 = vmatprep.mubr.msk.f32.mxu1 %vm267_vm2, %v3705_v62 }
0x216d   :  { %2945 = vmatmul.mubr.msk.f32.gmra.mrb[28].mxu1 %vm267_vm2, %v3707_v8 }
0x216e   :  { %2949 = vmatprep.mubr.msk.f32.mxu1 %vm1482_vm4, %v73_v0 }
0x2171   :  { %2950 = vmatmul.mubr.msk.f32.vlgmr.msra.gmra.mrb[18].mxu1 %vm1482_vm4, %v74_v1  ;;  %v85_v1 = vld [vmem:[%s3914_s1 + $0x100] sm:$0xff] }
0x2172   :  { %2952 = vmatprep.mubr.msk.f32.mxu1 %vm1482_vm4, %v75_v2 }
0x2175   :  { %2953 = vmatmul.mubr.msk.f32.gmra.mrb[20].mxu1 %vm1482_vm4, %v76_v5 }
0x2176   :  { %2955 = vmatprep.mubr.msk.f32.mxu1 %vm1482_vm4, %v77_v6 }
0x2179   :  { %2956 = vmatmul.mubr.msk.f32.gmra.mrb[22].mxu1 %vm1482_vm4, %v78_v33 }
0x217a   :  { %2958 = vmatprep.mubr.msk.f32.mxu1 %vm1482_vm4, %v79_v4  ;;  %v88_v4 = vld [vmem:[%s3914_s1 + $0x118] sm:$0xff] }
0x217d   :  { %2959 = vmatmul.mubr.msk.f32.gmra.mrb[24].mxu1 %vm1482_vm4, %v80_v7 }
0x217e   :  { %2961 = vmatprep.mubr.msk.f32.mxu1 %vm1482_vm4, %v81_v10 }
0x2181   :  { %2962 = vmatmul.mubr.msk.f32.gmra.mrb[26].mxu1 %vm1482_vm4, %v82_v9  ;;  %v87_v9 = vld [vmem:[%s3914_s1 + $0x110] sm:$0xff] }
0x2182   :  { %2964 = vmatprep.mubr.msk.f32.mxu1 %vm1482_vm4, %v83_v3 }
0x2185   :  { %2965 = vmatmul.mubr.msk.f32.gmra.mrb[28].mxu1 %vm1482_vm4, %v84_v11 }
0x2244   :  { %v2951_v59 = vpop.f32.mrb[18].mxu1 }
0x2245   :  { %v2180_v12 = vadd.f32 %v2951_v59, %v2569_v57  ;;  %v2116_v13 = vpop.f32.mrb[19].mxu1 }
0x2246   :  { %v2179_v49 = vadd.f32 %v2569_v57, %v2116_v13 }
0x2247   :  { %v2192_v15 = vmax.f32 %v2180_v12, 0.0 }
0x2248   :  { %v2191_v14 = vmax.f32 %v2179_v49, 0.0  ;;  %v2954_v41 = vpop.f32.mrb[20].mxu1 }
0x2249   :  { %v2182_v16 = vadd.f32 %v2954_v41, %v2569_v57  ;;  %v2126_v34 = vpop.f32.mrb[21].mxu1 }
0x224a   :  { %v2181_v17 = vadd.f32 %v2569_v57, %v2126_v34  ;;  %2975 = vmatprep.mubr.msk.f32.mxu0 %vm267_vm2, %v2191_v14  ;;  %v89_v34 = vld [vmem:[%s3914_s1 + $0x120] sm:$0xff] }
0x224b   :  { %2976 = vmatmul.mubr.msk.f32.vlgmr.msra.gmra.mrb[38].mxu0 %vm267_vm2, %v2192_v15  ;;  %v2194_v23 = vmax.f32 %v2182_v16, 0.0  ;;  %v90_v15 = vld [vmem:[%s3914_s1 + $0x128] sm:$0xff] }
0x224c   :  { %v2193_v18 = vmax.f32 %v2181_v17, 0.0  ;;  %v2957_v22 = vpop.f32.mrb[22].mxu1 }
0x224d   :  { %v2184_v24 = vadd.f32 %v2957_v22, %v2569_v57  ;;  %v2136_v52 = vpop.f32.mrb[23].mxu1 }
0x224e   :  { %v2183_v25 = vadd.f32 %v2569_v57, %v2136_v52  ;;  %2978 = vmatprep.mubr.msk.f32.mxu0 %vm267_vm2, %v2193_v18 }
0x224f   :  { %2979 = vmatmul.mubr.msk.f32.gmra.mrb[40].mxu0 %vm267_vm2, %v2194_v23  ;;  %v2196_v63 = vmax.f32 %v2184_v24, 0.0 }
0x2250   :  { %v2195_v26 = vmax.f32 %v2183_v25, 0.0  ;;  %v2960_v27 = vpop.f32.mrb[24].mxu1  ;;  %v92_v25 = vld [vmem:[%s3914_s1 + $0x138] sm:$0xff] }
0x2251   :  { %v2186_v20 = vadd.f32 %v2960_v27, %v2569_v57  ;;  %v2146_v55 = vpop.f32.mrb[25].mxu1 }
0x2252   :  { %v2185_v28 = vadd.f32 %v2569_v57, %v2146_v55  ;;  %2981 = vmatprep.mubr.msk.f32.mxu0 %vm267_vm2, %v2195_v26 }
0x2253   :  { %2982 = vmatmul.mubr.msk.f32.gmra.mrb[42].mxu0 %vm267_vm2, %v2196_v63  ;;  %v2198_v19 = vmax.f32 %v2186_v20, 0.0  ;;  %v91_v20 = vld [vmem:[%s3914_s1 + $0x130] sm:$0xff] }
0x2254   :  { %v2197_v31 = vmax.f32 %v2185_v28, 0.0  ;;  %v2963_v40 = vpop.f32.mrb[26].mxu1 }
0x2255   :  { %v2188_v43 = vadd.f32 %v2963_v40, %v2569_v57  ;;  %v2156_v44 = vpop.f32.mrb[27].mxu1 }
0x2256   :  { %v2187_v46 = vadd.f32 %v2569_v57, %v2156_v44  ;;  %2984 = vmatprep.mubr.msk.f32.mxu0 %vm267_vm2, %v2197_v31 }
0x2257   :  { %2985 = vmatmul.mubr.msk.f32.gmra.mrb[44].mxu0 %vm267_vm2, %v2198_v19  ;;  %v2200_v51 = vmax.f32 %v2188_v43, 0.0 }
0x2258   :  { %v2199_v47 = vmax.f32 %v2187_v46, 0.0  ;;  %v2966_v50 = vpop.f32.mrb[28].mxu1 }
0x2259   :  { %v2190_v53 = vadd.f32 %v2966_v50, %v2569_v57  ;;  %v2166_v35 = vpop.f32.mrb[29].mxu1  ;;  %v94_v50 = vld [vmem:[%s3914_s1 + $0x148] sm:$0xff] }
0x225a   :  { %v2189_v54 = vadd.f32 %v2569_v57, %v2166_v35  ;;  %2987 = vmatprep.mubr.msk.f32.mxu0 %vm267_vm2, %v2199_v47 }
0x225b   :  { %2988 = vmatmul.mubr.msk.f32.gmra.mrb[46].mxu0 %vm267_vm2, %v2200_v51  ;;  %v2202_v58 = vmax.f32 %v2190_v53, 0.0  ;;  %v93_v53 = vld [vmem:[%s3914_s1 + $0x140] sm:$0xff] }
0x225c   :  { %v2201_v56 = vmax.f32 %v2189_v54, 0.0 }
0x225e   :  { %2990 = vmatprep.mubr.msk.f32.mxu0 %vm267_vm2, %v2201_v56 }
0x225f   :  { %2991 = vmatmul.mubr.msk.f32.gmra.mrb[48].mxu0 %vm267_vm2, %v2202_v58 }
0x231e   :  { %v2977_v61 = vpop.f32.mrb[38].mxu0 }
0x231f   :  { %v2315_v0 = vadd.f32 %v2977_v61, %v3779_v29  ;;  %v2309_v2 = vpop.f32.mrb[39].mxu0 }
0x2320   :  { %v2310_v5 = vadd.f32 %v3779_v29, %v2309_v2 }
0x2321   :  { %v2369_v6 = vsub.f32 %v86_v21, %v2315_v0 }
0x2322   :  { %v2368_v33 = vsub.f32 %v85_v1, %v2310_v5  ;;  %v2980_v7 = vpop.f32.mrb[40].mxu0  ;;  %v96_v5 = vld [vmem:[%s3914_s1 + $0x158] sm:$0xff] }
0x2323   :  { %v2325_v10 = vadd.f32 %v2980_v7, %v3779_v29  ;;  %v2319_v3 = vpop.f32.mrb[41].mxu0  ;;  %v2381_v11 = vmul.f32 %v2369_v6, %v2369_v6 }
0x2324   :  { %v2320_v57 = vadd.f32 %v3779_v29, %v2319_v3  ;;  %v2380_v59 = vmul.f32 %v2368_v33, %v2368_v33  ;;  %v95_v33 = vld [vmem:[%s3914_s1 + $0x150] sm:$0xff] }
0x2325   :  { %v2371_v12 = vsub.f32 %v88_v4, %v2325_v10  ;;  %v2395_v13 = vsel %vm1482_vm4, %v2381_v11, 0.0 }
0x2326   :  { %v2370_v49 = vsub.f32 %v87_v9, %v2320_v57  ;;  %2396 = vadd.xlane.f32.xlu1 %v2395_v13  ;;  %v2983_v14 = vpop.f32.mrb[42].mxu0  ;;  %v2392_v41 = vsel %vm1482_vm4, %v2380_v59, 0.0 }
0x2327   :  { %v2335_v16 = vadd.f32 %v2983_v14, %v3779_v29  ;;  %2393 = vadd.xlane.f32.xlu0 %v2392_v41  ;;  %v2329_v17 = vpop.f32.mrb[43].mxu0  ;;  %v2383_v18 = vmul.f32 %v2371_v12, %v2371_v12 }
0x2328   :  { %v2330_v22 = vadd.f32 %v3779_v29, %v2329_v17  ;;  %v2382_v27 = vmul.f32 %v2370_v49, %v2370_v49 }
0x2329   :  { %v2401_v23 = vsel %vm1482_vm4, %v2383_v18, 0.0  ;;  %v2373_v24 = vsub.f32 %v90_v15, %v2335_v16 }
0x232a   :  { %v2372_v52 = vsub.f32 %v89_v34, %v2330_v22  ;;  %v2986_v26 = vpop.f32.mrb[44].mxu0  ;;  %v2398_v44 = vsel %vm1482_vm4, %v2382_v27, 0.0 }
0x232b   :  { %v2345_v63 = vadd.f32 %v2986_v26, %v3779_v29  ;;  %2402 = vadd.xlane.f32.xlu0 %v2401_v23  ;;  %v2339_v55 = vpop.f32.mrb[45].mxu0  ;;  %v2385_v47 = vmul.f32 %v2373_v24, %v2373_v24 }
0x232c   :  { %v2340_v28 = vadd.f32 %v3779_v29, %v2339_v55  ;;  %v2384_v31 = vmul.f32 %v2372_v52, %v2372_v52 }
0x232d   :  { %v2375_v40 = vsub.f32 %v92_v25, %v2345_v63  ;;  %v2407_v1 = vsel %vm1482_vm4, %v2385_v47, 0.0 }
0x232e   :  { %v2374_v19 = vsub.f32 %v91_v20, %v2340_v28  ;;  %v2989_v43 = vpop.f32.mrb[46].mxu0  ;;  %v2404_v46 = vsel %vm1482_vm4, %v2384_v31, 0.0 }
0x232f   :  { %v2355_v51 = vadd.f32 %v2989_v43, %v3779_v29  ;;  %2399 = vadd.xlane.f32.xlu0 %v2398_v44  ;;  %2405 = vadd.xlane.f32.xlu1 %v2404_v46  ;;  %v2349_v35 = vpop.f32.mrb[47].mxu0  ;;  %v2387_v58 = vmul.f32 %v2375_v40, %v2375_v40 }
0x2330   :  { %v2350_v54 = vadd.f32 %v3779_v29, %v2349_v35  ;;  %v2386_v56 = vmul.f32 %v2374_v19, %v2374_v19 }
0x2331   :  { %v2377_v21 = vsub.f32 %v94_v50, %v2355_v51  ;;  %v2413_v9 = vsel %vm1482_vm4, %v2387_v58, 0.0 }
0x2332   :  { %v2376_v61 = vsub.f32 %v93_v53, %v2350_v54  ;;  %v2992_v0 = vpop.f32.mrb[48].mxu0  ;;  %v2410_v2 = vsel %vm1482_vm4, %v2386_v56, 0.0 }
0x2333   :  { %v2365_v6 = vadd.f32 %v2992_v0, %v3779_v29  ;;  %2408 = vadd.xlane.f32.xlu0 %v2407_v1  ;;  %2411 = vadd.xlane.f32.xlu1 %v2410_v2  ;;  %v2359_v4 = vpop.f32.mrb[49].mxu0  ;;  %v2389_v59 = vmul.f32 %v2377_v21, %v2377_v21 }
0x2334   :  { %v2360_v7 = vadd.f32 %v3779_v29, %v2359_v4  ;;  %v2388_v10 = vmul.f32 %v2376_v61, %v2376_v61 }
0x2335   :  { %v2379_v3 = vsub.f32 %v96_v5, %v2365_v6  ;;  %v2419_v13 = vsel %vm1482_vm4, %v2389_v59, 0.0 }
0x2336   :  { %v2378_v11 = vsub.f32 %v95_v33, %v2360_v7  ;;  %v2416_v57 = vsel %vm1482_vm4, %v2388_v10, 0.0 }
0x2337   :  { %2414 = vadd.xlane.f32.xlu0 %v2413_v9  ;;  %2417 = vadd.xlane.f32.xlu1 %v2416_v57  ;;  %v2391_v14 = vmul.f32 %v2379_v3, %v2379_v3 }
0x2338   :  { %v2390_v12 = vmul.f32 %v2378_v11, %v2378_v11 }
0x2339   :  { %v2425_v29 = vsel %vm1482_vm4, %v2391_v14, 0.0 }
0x233a   :  { %v2422_v49 = vsel %vm1482_vm4, %v2390_v12, 0.0 }
0x233b   :  { %2420 = vadd.xlane.f32.xlu0 %v2419_v13  ;;  %2423 = vadd.xlane.f32.xlu1 %v2422_v49 }
0x233f   :  { %2426 = vadd.xlane.f32.xlu0 %v2425_v29 }
0x23b3   :  { %v2397_v41 = vpop.xlane.xlu1 %2396 }
0x23b4   :  { %v2430_v15 = vmul.f32 0.25, %v2397_v41  ;;  %v2394_v16 = vpop.xlane.xlu0 %2393 }
0x23b5   :  { %v2429_v34 = vmul.f32 0.25, %v2394_v16 }
0x23b6   :  { %v2442_v17 = vsel %vm267_vm2, %v3654_v32, %v2430_v15 }
0x23b7   :  { %v2455_v18 = vsel %vm2453_vm5, %v2442_v17, 0.0  ;;  %v2441_v22 = vsel %vm267_vm2, %v3652_v39, %v2429_v34 }
0x23b8   :  { %2467 = vst [vmem:[%s3916_s3 + $0x8] sm:$0xff] %v2455_v18  ;;  %v2454_v23 = vsel %vm2453_vm5, %v2441_v22, 0.0  ;;  %v2403_v24 = vpop.xlane.xlu0 %2402 }
0x23b9   :  { %2466 = vst [vmem:[%s3916_s3] sm:$0xff] %v2454_v23  ;;  %v2432_v52 = vmul.f32 0.25, %v2403_v24 }
0x23bb   :  { %v2444_v32 = vsel %vm267_vm2, %v3663_v42, %v2432_v52 }
0x23bc   :  { %v2457_v25 = vsel %vm2453_vm5, %v2444_v32, 0.0  ;;  %v2400_v26 = vpop.xlane.xlu0 %2399  ;;  %v2406_v27 = vpop.xlane.xlu1 %2405 }
0x23bd   :  { %2469 = vst [vmem:[%s3916_s3 + $0x18] sm:$0xff] %v2457_v25  ;;  %v2431_v39 = vmul.f32 0.25, %v2400_v26  ;;  %v2433_v63 = vmul.f32 0.25, %v2406_v27 }
0x23bf   :  { %v2443_v20 = vsel %vm267_vm2, %v3660_v37, %v2431_v39  ;;  %v2445_v55 = vsel %vm267_vm2, %v3669_v38, %v2433_v63 }
0x23c0   :  { %v2456_v28 = vsel %vm2453_vm5, %v2443_v20, 0.0  ;;  %v2458_v42 = vsel %vm2453_vm5, %v2445_v55, 0.0  ;;  %v2409_v31 = vpop.xlane.xlu0 %2408  ;;  %v2412_v40 = vpop.xlane.xlu1 %2411 }
0x23c1   :  { %2468 = vst [vmem:[%s3916_s3 + $0x10] sm:$0xff] %v2456_v28  ;;  %2470 = vst [vmem:[%s3916_s3 + $0x20] sm:$0xff] %v2458_v42  ;;  %v2434_v19 = vmul.f32 0.25, %v2409_v31  ;;  %v2435_v43 = vmul.f32 0.25, %v2412_v40 }
0x23c3   :  { %v2446_v37 = vsel %vm267_vm2, %v3671_v45, %v2434_v19  ;;  %v2447_v38 = vsel %vm267_vm2, %v3677_v30, %v2435_v43 }
0x23c4   :  { %v2459_v44 = vsel %vm2453_vm5, %v2446_v37, 0.0  ;;  %v2460_v46 = vsel %vm2453_vm5, %v2447_v38, 0.0  ;;  %v2415_v47 = vpop.xlane.xlu0 %2414  ;;  %v2418_v50 = vpop.xlane.xlu1 %2417 }
0x23c5   :  { %2471 = vst [vmem:[%s3916_s3 + $0x28] sm:$0xff] %v2459_v44  ;;  %2472 = vst [vmem:[%s3916_s3 + $0x30] sm:$0xff] %v2460_v46  ;;  %v2436_v51 = vmul.f32 0.25, %v2415_v47  ;;  %v2437_v53 = vmul.f32 0.25, %v2418_v50 }
0x23c7   :  { %v2448_v45 = vsel %vm267_vm2, %v3679_v48, %v2436_v51  ;;  %v2449_v30 = vsel %vm267_vm2, %v3697_v60, %v2437_v53 }
0x23c8   :  { %v2461_v35 = vsel %vm2453_vm5, %v2448_v45, 0.0  ;;  %v2462_v54 = vsel %vm2453_vm5, %v2449_v30, 0.0  ;;  %v2421_v56 = vpop.xlane.xlu0 %2420  ;;  %v2424_v58 = vpop.xlane.xlu1 %2423 }
0x23c9   :  { %2473 = vst [vmem:[%s3916_s3 + $0x38] sm:$0xff] %v2461_v35  ;;  %2474 = vst [vmem:[%s3916_s3 + $0x40] sm:$0xff] %v2462_v54  ;;  %v2438_v21 = vmul.f32 0.25, %v2421_v56  ;;  %v2439_v61 = vmul.f32 0.25, %v2424_v58 }
0x23cb   :  { %v2450_v48 = vsel %vm267_vm2, %v3699_v36, %v2438_v21  ;;  %v2451_v60 = vsel %vm267_vm2, %v3705_v62, %v2439_v61 }
0x23cc   :  { %v2463_v0 = vsel %vm2453_vm5, %v2450_v48, 0.0  ;;  %v2464_v1 = vsel %vm2453_vm5, %v2451_v60, 0.0  ;;  %v2427_v2 = vpop.xlane.xlu0 %2426 }
0x23cd   :  { %2475 = vst [vmem:[%s3916_s3 + $0x48] sm:$0xff] %v2463_v0  ;;  %2476 = vst [vmem:[%s3916_s3 + $0x50] sm:$0xff] %v2464_v1  ;;  %v2440_v5 = vmul.f32 0.25, %v2427_v2 }
0x23cf   :  { %v2452_v36 = vsel %vm267_vm2, %v3707_v8, %v2440_v5 }
0x23d0   :  { %v2465_v6 = vsel %vm2453_vm5, %v2452_v36, 0.0 }
0x23d1   :  { %2477 = vst [vmem:[%s3916_s3 + $0x58] sm:$0xff] %v2465_v6 }
0x23d2   :  { %2482 = vsyncpa [#allocation3], 1 }

</bundles_post_ra>
